<compile_context>
chip_gen: v7x
topology: tpu7x:2x2x1
jax: 0.10.0
libtpu: 0.0.40
codegen_flags: <defaults>
</compile_context>

<pallas_src>
import numpy as np
import jax
import jax.numpy as jnp
from jax.experimental import pallas as pl
from jax.experimental.pallas import tpu as pltpu


NODE_TYPES = ('arrival', 'waiting', 'resources', 'busy', 'transition')
EDGE_TYPES = (
    ('arrival', 'to', 'waiting'),
    ('waiting', 'to', 'transition'),
    ('resources', 'to', 'transition'),
    ('busy', 'to', 'resources'),
    ('transition', 'to', 'busy'),
    ('transition', 'to', 'arrival'),
)


def _align8(n):
    return ((n + 7) // 8) * 8


def _wlayout(K, C, n_total, r_total):
    """Row layout of one HANConv layer's packed weight slab (8-row-aligned sections)."""
    layout, off = {}, 0
    for name, nr in (('wcat', K), ('bias', n_total), ('lsrc', r_total),
                     ('ldst', r_total), ('kw', C), ('kb', 1), ('q', 1)):
        layout[name] = (off, nr)
        off += _align8(nr)
    layout['__total__'] = off
    return layout


def init_layer_slab(key, in_dims, C, node_types, edge_types, num_nodes):
    """Deterministic init of ONE HANConv layer, pre-packed into a single [rows, C] slab."""
    n_total = sum(num_nodes[nt] for nt in node_types)
    r_total = sum(num_nodes[et[2]] for et in edge_types)
    K = sum(in_dims[nt] for nt in node_types)
    layout = _wlayout(K, C, n_total, r_total)
    keys = iter(jax.random.split(key, 4 * len(node_types) + 4 * len(edge_types) + 8))

    wcat_rows, bias_rows = [], []
    for nt in node_types:
        fin = in_dims[nt]
        w = 0.2 * jax.random.normal(next(keys), (C, fin), jnp.float32)
        b = 0.1 * jax.random.normal(next(keys), (C,), jnp.float32)
        wcat_rows.append(w.T)                                             # [fin, C] pre-transposed
        bias_rows.append(jnp.broadcast_to(b[None, :], (num_nodes[nt], C)))
    lsrc_rows, ldst_rows = [], []
    for et in edge_types:
        nd = num_nodes[et[2]]
        ls = 0.2 * jax.random.normal(next(keys), (1, C), jnp.float32)
        ld = 0.2 * jax.random.normal(next(keys), (1, C), jnp.float32)
        lsrc_rows.append(jnp.broadcast_to(ls, (nd, C)))                   # expanded per slab row
        ldst_rows.append(jnp.broadcast_to(ld, (nd, C)))
    k_lin_w = 0.2 * jax.random.normal(next(keys), (C, C), jnp.float32)
    k_lin_b = 0.1 * jax.random.normal(next(keys), (1, C), jnp.float32)
    q = 0.2 * jax.random.normal(next(keys), (1, C), jnp.float32)

    def put(slab, name, arr):
        r0, nr = layout[name]
        return slab.at[r0:r0 + nr, :].set(arr)

    slab = jnp.zeros((layout['__total__'], C), jnp.float32)
    slab = put(slab, 'wcat', jnp.concatenate(wcat_rows, axis=0))
    slab = put(slab, 'bias', jnp.concatenate(bias_rows, axis=0))
    slab = put(slab, 'lsrc', jnp.concatenate(lsrc_rows, axis=0))
    slab = put(slab, 'ldst', jnp.concatenate(ldst_rows, axis=0))
    slab = put(slab, 'kw', k_lin_w.T)
    slab = put(slab, 'kb', k_lin_b)
    slab = put(slab, 'q', q)
    return slab


def pack_weight_slabs(w1, w2):
    width = max(w1.shape[1], w2.shape[1])

    def pad(w):
        return jnp.pad(w, ((0, 0), (0, width - w.shape[1])))

    return jnp.concatenate([pad(w1), pad(w2)], axis=0)


def build_forward(node_types, edge_types, num_nodes, feat_dims, hidden, output_size):
    nt_list = list(node_types)
    n_types = len(nt_list)

    # ---------------- static graph structure ----------------
    node_off, off = {}, 0
    for nt in nt_list:
        node_off[nt] = off
        off += num_nodes[nt]
    n_total = off

    feat_off1, off = {}, 0
    for nt in nt_list:
        feat_off1[nt] = off
        off += feat_dims[nt]
    k1 = off                                  # layer-1 block-diagonal width
    k2 = n_types * hidden                     # layer-2 block-diagonal width

    edge_row_off, off = [], 0
    for et in edge_types:
        edge_row_off.append(off)
        off += num_nodes[et[2]]
    r_total = off                             # total (edge_type, dst_node) slab rows

    rels = {nt: [] for nt in nt_list}
    for e, et in enumerate(edge_types):
        rels[et[2]].append(e)
    assert all(len(rels[nt]) >= 1 for nt in nt_list), \
        "every node type must be the destination of at least one relation"
    multi = [nt for nt in nt_list if len(rels[nt]) > 1]
    # TODO(synk): general n-relation semantic attention; this metadata only needs the
    # 2-relation case for 'transition'.
    assert multi == ['transition'] and len(rels['transition']) == 2
    e_a, e_b = rels['transition']
    nd_t = num_nodes['transition']
    assert edge_row_off[e_b] == edge_row_off[e_a] + nd_t, \
        "'transition' relation row blocks must be contiguous"
    tr0 = edge_row_off[e_a]
    trans_node_off = node_off['transition']

    # ---------------- structural one-hot matrices, packed once ----------------
    Dsel = np.zeros((r_total, n_total), np.float32)      # slab row -> dst node feature
    for e, et in enumerate(edge_types):
        d0 = node_off[et[2]]
        for i in range(num_nodes[et[2]]):
            Dsel[edge_row_off[e] + i, d0 + i] = 1.0
    Gsel = np.zeros((n_total, r_total), np.float32)      # node row <- its single-relation slab row
    for nt in nt_list:
        if len(rels[nt]) == 1:
            e = rels[nt][0]
            for i in range(num_nodes[nt]):
                Gsel[node_off[nt] + i, edge_row_off[e] + i] = 1.0
    T1 = np.zeros((n_total, r_total), np.float32)        # transition <- relation A rows
    T2 = np.zeros((n_total, r_total), np.float32)        # transition <- relation B rows
    for i in range(nd_t):
        T1[trans_node_off + i, edge_row_off[e_a] + i] = 1.0
        T2[trans_node_off + i, edge_row_off[e_b] + i] = 1.0
    typemask = np.zeros((n_total, n_types), np.float32)  # node -> node-type one-hot
    for t, nt in enumerate(nt_list):
        typemask[node_off[nt]:node_off[nt] + num_nodes[nt], t] = 1.0

    s_width = max(n_total, r_total, n_types)
    s_rows, ro = {}, 0
    struct_np = np.zeros((r_total + 4 * n_total, s_width), np.float32)
    for name, arr in (('Dsel', Dsel), ('Gsel', Gsel), ('T1', T1), ('T2', T2),
                      ('typemask', typemask)):
        s_rows[name] = (ro, arr.shape[0], arr.shape[1])
        struct_np[ro:ro + arr.shape[0], :arr.shape[1]] = arr
        ro += arr.shape[0]
    struct = jnp.asarray(struct_np)

    # ---------------- packed weight slab layout ----------------
    l1 = _wlayout(k1, hidden, n_total, r_total)
    l2 = _wlayout(k2, output_size, n_total, r_total)
    w2_base = l1['__total__']
    w_rows = l1['__total__'] + l2['__total__']
    w_width = max(hidden, output_size)

    data_rows = n_total + r_total
    data_width = max(k1, n_total)

    # ---------------- the fused kernel ----------------
    def kernel(data_ref, struct_ref, w_ref, o_ref):
        data = data_ref[...]
        S = struct_ref[...]
        W = w_ref[...]

        def sget(name):
            r0, nr, nc = s_rows[name]
            return S[r0:r0 + nr, 0:nc]

        Dsel_v = sget('Dsel')
        Gsel_v = sget('Gsel')
        T1_v = sget('T1')
        T2_v = sget('T2')
        tmask = sget('typemask')

        x_bd1 = data[0:n_total, 0:k1]
        mask = data[n_total:n_total + r_total, 0:n_total] > 0.0

        def wget(base, layout, name, C):
            r0, nr = layout[name]
            return W[base + r0:base + r0 + nr, 0:C]

        def han_layer(x_bd, base, layout, C):
            wcat = wget(base, layout, 'wcat', C)
            bias = wget(base, layout, 'bias', C)
            lsrc = wget(base, layout, 'lsrc', C)
            ldst = wget(base, layout, 'ldst', C)
            kw = wget(base, layout, 'kw', C)
            kb = wget(base, layout, 'kb', C)
            q = wget(base, layout, 'q', C)

            # (1) all node-type projections: ONE block-diagonal matmul + bias rows
            x_all = jnp.dot(x_bd, wcat, preferred_element_type=jnp.float32) + bias    # [N, C]

            # (2) all edge-type attention scores in one [R, N] slab
            x_dst = jnp.dot(Dsel_v, x_all, preferred_element_type=jnp.float32)        # [R, C]
            a_dst = jnp.sum(x_dst * ldst, axis=1, keepdims=True)                      # [R, 1]
            a_src = jax.lax.dot_general(lsrc, x_all, (((1,), (1,)), ((), ())),
                                        preferred_element_type=jnp.float32)           # [R, N]
            s = a_dst + a_src
            s = jnp.where(s > 0.0, s, 0.2 * s)                 # leaky_relu(0.2)
            s = jnp.where(mask, s, -1e30)
            m = jnp.max(s, axis=1, keepdims=True)
            m = jnp.where(m < -1e29, 0.0, m)                   # dst nodes with no incoming edges
            p = jnp.where(mask, jnp.exp(s - m), 0.0)
            den = jnp.sum(p, axis=1, keepdims=True)
            den = jnp.where(den == 0.0, 1.0, den)
            attn = p / den                                     # per-dst masked softmax [R, N]

            # (3) all edge-type aggregations: ONE matmul + HANConv's per-relation ReLU
            agg = jnp.maximum(
                jnp.dot(attn, x_all, preferred_element_type=jnp.float32), 0.0)        # [R, C]

            # (4) semantic attention: only 'transition' has 2 incoming relations
            ht = jnp.tanh(jnp.dot(agg[tr0:tr0 + 2 * nd_t, :], kw,
                                  preferred_element_type=jnp.float32) + kb)           # [2*nd_t, C]
            mh = jnp.concatenate(
                [jnp.mean(ht[0:nd_t, :], axis=0, keepdims=True),
                 jnp.mean(ht[nd_t:2 * nd_t, :], axis=0, keepdims=True)], axis=0)      # [2, C]
            sc = jnp.sum(q * mh, axis=1, keepdims=True)                               # [2, 1]
            sc = sc - jnp.max(sc, axis=0, keepdims=True)
            es = jnp.exp(sc)
            wr = es / jnp.sum(es, axis=0, keepdims=True)                              # [2, 1]

            # (5) scatter relation outputs back to node rows with ONE matmul
            comb = Gsel_v + wr[0:1, 0:1] * T1_v + wr[1:2, 0:1] * T2_v                 # [N, R]
            return jnp.dot(comb, agg, preferred_element_type=jnp.float32)             # [N, C]

        x1 = jnp.maximum(han_layer(x_bd1, 0, l1, hidden), 0.0)          # inter-layer F.relu
        # layer-2 block-diagonal input (every node type projects from `hidden` features)
        x_bd2 = jnp.concatenate(
            [x1 * tmask[:, t:t + 1] for t in range(n_types)], axis=1)                 # [N, n_types*hidden]
        x2 = han_layer(x_bd2, w2_base, l2, output_size)                               # [N, out]

        # 'graph' branch, no action mask -> softmax over dim 0 of the transition scores.
        # TODO(synk): the optional action-mask branch and the batched pyg_softmax branch
        # of the original forward are not implemented here.
        t = x2[trans_node_off:trans_node_off + nd_t, :]
        t = t - jnp.max(t, axis=0, keepdims=True)
        e = jnp.exp(t)
        o_ref[...] = e / jnp.sum(e, axis=0, keepdims=True)

    # ---------------- wrapper ----------------
    vmem = pl.BlockSpec(memory_space=pltpu.MemorySpace.VMEM)
    cost = pl.CostEstimate(flops=250_000, transcendentals=2_500, bytes_accessed=50_000)
    out_shape = jax.ShapeDtypeStruct((nd_t, output_size), jnp.float32)

    # TODO(synk): for batched RL rollouts, add a leading batch grid axis with
    # dimension_semantics=("parallel",) so v7x's second TensorCore is used.
    def forward(weights, x_dict, adj_dict):
        assert weights.shape == (w_rows, w_width)
        data = jnp.zeros((data_rows, data_width), jnp.float32)
        for nt in nt_list:
            r0, c0 = node_off[nt], feat_off1[nt]
            data = data.at[r0:r0 + num_nodes[nt], c0:c0 + feat_dims[nt]].set(
                x_dict[nt].astype(jnp.float32))
        for e, et in enumerate(edge_types):
            r0 = n_total + edge_row_off[e]
            c0 = node_off[et[0]]
            data = data.at[r0:r0 + num_nodes[et[2]], c0:c0 + num_nodes[et[0]]].set(
                adj_dict[et].astype(jnp.float32))
        return pl.pallas_call(
            kernel,
            out_shape=out_shape,
            in_specs=[vmem, vmem, vmem],
            out_specs=vmem,
            cost_estimate=cost,
        )(data, struct, weights)

    return jax.jit(forward)


if __name__ == "__main__":
    key = jax.random.PRNGKey(0)

    # node types / feature dims follow HeteroActor.reset_parameters:
    # arrival:2, waiting:2, resources:4, busy:5, transition:1
    node_feat_dims = {'arrival': 2, 'waiting': 2, 'resources': 4, 'busy': 5, 'transition': 1}
    num_nodes = {'arrival': 4, 'waiting': 4, 'resources': 4, 'busy': 4, 'transition': 8}
    hidden, output_size = 16, 4

    ks = jax.random.split(key, 16)
    x_dict = {nt: jax.random.normal(ks[i], (num_nodes[nt], node_feat_dims[nt]), jnp.float32)
              for i, nt in enumerate(NODE_TYPES)}

    # deterministic edge structure as dense adjacency masks adj[dst, src]
    adj_dict = {}
    for j, et in enumerate(EDGE_TYPES):
        src, _, dst = et
        nd, ns = num_nodes[dst], num_nodes[src]
        kk = jax.random.fold_in(ks[10], j)
        adj = (jax.random.uniform(kk, (nd, ns)) < 0.5).astype(jnp.float32)
        adj = adj.at[:, 0].set(1.0)   # every dst node has >= 1 incoming edge
        adj_dict[et] = adj

    w1 = init_layer_slab(jax.random.fold_in(key, 1), node_feat_dims, hidden,
                         NODE_TYPES, EDGE_TYPES, num_nodes)
    w2 = init_layer_slab(jax.random.fold_in(key, 2), {nt: hidden for nt in NODE_TYPES},
                         output_size, NODE_TYPES, EDGE_TYPES, num_nodes)
    weights = pack_weight_slabs(w1, w2)

    forward = build_forward(NODE_TYPES, EDGE_TYPES, num_nodes, node_feat_dims,
                            hidden, output_size)
    out = forward(weights, x_dict, adj_dict)
    out = jax.block_until_ready(out)

    assert out.shape == (num_nodes['transition'], output_size)
    assert bool(jnp.all(jnp.isfinite(out)))
    col_sums = jnp.sum(out, axis=0)
    assert bool(jnp.allclose(col_sums, jnp.ones_like(col_sums), atol=1e-4))
    print("KERNEL_OK")
</pallas_src>

<mosaic_0001>
module attributes {stable_mosaic.version = 11 : i64} {
  func.func @kernel(%arg0: memref<56x24xf32, #tpu.memory_space<vmem>>, %arg1: memref<128x32xf32, #tpu.memory_space<vmem>>, %arg2: memref<328x16xf32, #tpu.memory_space<vmem>>, %arg3: memref<8x4xf32, #tpu.memory_space<vmem>>) attributes {dimension_semantics = [], scalar_prefetch = 0 : i64, scratch_operands = 0 : i64, tpu.core_type = #tpu.core_type<tc>} {
    %c0 = arith.constant 0 : index
    %c0_0 = arith.constant 0 : index
    %0 = vector.load %arg0[%c0, %c0_0] : memref<56x24xf32, #tpu.memory_space<vmem>>, vector<56x24xf32>
    %c0_1 = arith.constant 0 : index
    %c0_2 = arith.constant 0 : index
    %1 = vector.load %arg1[%c0_1, %c0_2] : memref<128x32xf32, #tpu.memory_space<vmem>>, vector<128x32xf32>
    %c0_3 = arith.constant 0 : index
    %c0_4 = arith.constant 0 : index
    %2 = vector.load %arg2[%c0_3, %c0_4] : memref<328x16xf32, #tpu.memory_space<vmem>>, vector<328x16xf32>
    %3 = vector.extract_strided_slice %1 {offsets = [0, 0], sizes = [32, 24], strides = [1, 1]} : vector<128x32xf32> to vector<32x24xf32>
    %4 = vector.extract_strided_slice %1 {offsets = [32, 0], sizes = [24, 32], strides = [1, 1]} : vector<128x32xf32> to vector<24x32xf32>
    %5 = vector.extract_strided_slice %1 {offsets = [56, 0], sizes = [24, 32], strides = [1, 1]} : vector<128x32xf32> to vector<24x32xf32>
    %6 = vector.extract_strided_slice %1 {offsets = [80, 0], sizes = [24, 32], strides = [1, 1]} : vector<128x32xf32> to vector<24x32xf32>
    %7 = vector.extract_strided_slice %1 {offsets = [104, 0], sizes = [24, 5], strides = [1, 1]} : vector<128x32xf32> to vector<24x5xf32>
    %8 = vector.extract_strided_slice %0 {offsets = [0, 0], sizes = [24, 14], strides = [1, 1]} : vector<56x24xf32> to vector<24x14xf32>
    %9 = vector.extract_strided_slice %0 {offsets = [24, 0], sizes = [32, 24], strides = [1, 1]} : vector<56x24xf32> to vector<32x24xf32>
    %cst = arith.constant 0.000000e+00 : f32
    %10 = vector.broadcast %cst : f32 to vector<32x24xf32>
    %11 = arith.cmpf ogt, %9, %10 : vector<32x24xf32>
    %12 = vector.extract_strided_slice %2 {offsets = [0, 0], sizes = [14, 16], strides = [1, 1]} : vector<328x16xf32> to vector<14x16xf32>
    %13 = vector.extract_strided_slice %2 {offsets = [16, 0], sizes = [24, 16], strides = [1, 1]} : vector<328x16xf32> to vector<24x16xf32>
    %14 = vector.extract_strided_slice %2 {offsets = [40, 0], sizes = [32, 16], strides = [1, 1]} : vector<328x16xf32> to vector<32x16xf32>
    %15 = vector.extract_strided_slice %2 {offsets = [72, 0], sizes = [32, 16], strides = [1, 1]} : vector<328x16xf32> to vector<32x16xf32>
    %16 = vector.extract_strided_slice %2 {offsets = [104, 0], sizes = [16, 16], strides = [1, 1]} : vector<328x16xf32> to vector<16x16xf32>
    %17 = vector.extract_strided_slice %2 {offsets = [120, 0], sizes = [1, 16], strides = [1, 1]} : vector<328x16xf32> to vector<1x16xf32>
    %18 = vector.extract_strided_slice %2 {offsets = [128, 0], sizes = [1, 16], strides = [1, 1]} : vector<328x16xf32> to vector<1x16xf32>
    %cst_5 = arith.constant dense<0.000000e+00> : vector<24x16xf32>
    %19 = tpu.matmul %8, %12, %cst_5 {dimension_numbers = #tpu.dot_dimension_numbers<[1], [0], [0], [1], [0, 0, 1, 1], [], []>} : vector<24x14xf32>, vector<14x16xf32>, vector<24x16xf32> -> vector<24x16xf32>
    %20 = arith.addf %19, %13 : vector<24x16xf32>
    %cst_6 = arith.constant dense<0.000000e+00> : vector<32x16xf32>
    %21 = tpu.matmul %3, %20, %cst_6 {dimension_numbers = #tpu.dot_dimension_numbers<[1], [0], [0], [1], [0, 0, 1, 1], [], []>} : vector<32x24xf32>, vector<24x16xf32>, vector<32x16xf32> -> vector<32x16xf32>
    %22 = arith.mulf %21, %15 : vector<32x16xf32>
    %cst_7 = arith.constant dense<0.000000e+00> : vector<32xf32>
    %23 = vector.multi_reduction <add>, %22, %cst_7 [1] : vector<32x16xf32> to vector<32xf32>
    %24 = vector.shape_cast %23 : vector<32xf32> to vector<32x1xf32>
    %cst_8 = arith.constant dense<0.000000e+00> : vector<32x24xf32>
    %25 = tpu.matmul %14, %20, %cst_8 {dimension_numbers = #tpu.dot_dimension_numbers<[1], [1], [0], [0], [0, 0, 1, 0], [], []>} : vector<32x16xf32>, vector<24x16xf32>, vector<32x24xf32> -> vector<32x24xf32>
    %26 = vector.broadcast %24 : vector<32x1xf32> to vector<32x24xf32>
    %27 = arith.addf %26, %25 : vector<32x24xf32>
    %cst_9 = arith.constant 0.000000e+00 : f32
    %28 = vector.broadcast %cst_9 : f32 to vector<32x24xf32>
    %29 = arith.cmpf ogt, %27, %28 : vector<32x24xf32>
    %cst_10 = arith.constant 2.000000e-01 : f32
    %30 = vector.broadcast %cst_10 : f32 to vector<32x24xf32>
    %31 = arith.mulf %30, %27 : vector<32x24xf32>
    %32 = arith.select %29, %27, %31 : vector<32x24xi1>, vector<32x24xf32>
    %cst_11 = arith.constant -1.000000e+30 : f32
    %33 = vector.broadcast %cst_11 : f32 to vector<32x24xf32>
    %34 = arith.select %11, %32, %33 : vector<32x24xi1>, vector<32x24xf32>
    %cst_12 = arith.constant dense<0xFF800000> : vector<32xf32>
    %35 = vector.multi_reduction <maximumf>, %34, %cst_12 [1] : vector<32x24xf32> to vector<32xf32>
    %36 = vector.shape_cast %35 : vector<32xf32> to vector<32x1xf32>
    %cst_13 = arith.constant -1.000000e+29 : f32
    %37 = vector.broadcast %cst_13 : f32 to vector<32x1xf32>
    %38 = arith.cmpf olt, %36, %37 : vector<32x1xf32>
    %cst_14 = arith.constant 0.000000e+00 : f32
    %39 = vector.broadcast %cst_14 : f32 to vector<32x1xf32>
    %40 = arith.select %38, %39, %36 : vector<32x1xi1>, vector<32x1xf32>
    %41 = vector.broadcast %40 : vector<32x1xf32> to vector<32x24xf32>
    %42 = arith.subf %34, %41 : vector<32x24xf32>
    %43 = math.exp %42 : vector<32x24xf32>
    %cst_15 = arith.constant 0.000000e+00 : f32
    %44 = vector.broadcast %cst_15 : f32 to vector<32x24xf32>
    %45 = arith.select %11, %43, %44 : vector<32x24xi1>, vector<32x24xf32>
    %cst_16 = arith.constant dense<0.000000e+00> : vector<32xf32>
    %46 = vector.multi_reduction <add>, %45, %cst_16 [1] : vector<32x24xf32> to vector<32xf32>
    %47 = vector.shape_cast %46 : vector<32xf32> to vector<32x1xf32>
    %cst_17 = arith.constant 0.000000e+00 : f32
    %48 = vector.broadcast %cst_17 : f32 to vector<32x1xf32>
    %49 = arith.cmpf oeq, %47, %48 : vector<32x1xf32>
    %cst_18 = arith.constant 1.000000e+00 : f32
    %50 = vector.broadcast %cst_18 : f32 to vector<32x1xf32>
    %51 = arith.select %49, %50, %47 : vector<32x1xi1>, vector<32x1xf32>
    %52 = vector.broadcast %51 : vector<32x1xf32> to vector<32x24xf32>
    %53 = arith.divf %45, %52 : vector<32x24xf32>
    %cst_19 = arith.constant dense<0.000000e+00> : vector<32x16xf32>
    %54 = tpu.matmul %53, %20, %cst_19 {dimension_numbers = #tpu.dot_dimension_numbers<[1], [0], [0], [1], [0, 0, 1, 1], [], []>} : vector<32x24xf32>, vector<24x16xf32>, vector<32x16xf32> -> vector<32x16xf32>
    %cst_20 = arith.constant 0.000000e+00 : f32
    %55 = vector.broadcast %cst_20 : f32 to vector<32x16xf32>
    %56 = arith.maximumf %54, %55 : vector<32x16xf32>
    %57 = vector.extract_strided_slice %56 {offsets = [4, 0], sizes = [16, 16], strides = [1, 1]} : vector<32x16xf32> to vector<16x16xf32>
    %cst_21 = arith.constant dense<0.000000e+00> : vector<16x16xf32>
    %58 = tpu.matmul %57, %16, %cst_21 {dimension_numbers = #tpu.dot_dimension_numbers<[1], [0], [0], [1], [0, 0, 1, 1], [], []>} : vector<16x16xf32>, vector<16x16xf32>, vector<16x16xf32> -> vector<16x16xf32>
    %59 = vector.broadcast %17 : vector<1x16xf32> to vector<16x16xf32>
    %60 = arith.addf %58, %59 : vector<16x16xf32>
    %61 = math.tanh %60 : vector<16x16xf32>
    %62 = vector.extract_strided_slice %61 {offsets = [0, 0], sizes = [8, 16], strides = [1, 1]} : vector<16x16xf32> to vector<8x16xf32>
    %cst_22 = arith.constant dense<0.000000e+00> : vector<16xf32>
    %63 = vector.multi_reduction <add>, %62, %cst_22 [0] : vector<8x16xf32> to vector<16xf32>
    %64 = vector.shape_cast %63 : vector<16xf32> to vector<1x16xf32>
    %cst_23 = arith.constant 8.000000e+00 : f32
    %65 = vector.broadcast %cst_23 : f32 to vector<1x16xf32>
    %66 = arith.divf %64, %65 : vector<1x16xf32>
    %67 = vector.extract_strided_slice %61 {offsets = [8, 0], sizes = [8, 16], strides = [1, 1]} : vector<16x16xf32> to vector<8x16xf32>
    %cst_24 = arith.constant dense<0.000000e+00> : vector<16xf32>
    %68 = vector.multi_reduction <add>, %67, %cst_24 [0] : vector<8x16xf32> to vector<16xf32>
    %69 = vector.shape_cast %68 : vector<16xf32> to vector<1x16xf32>
    %cst_25 = arith.constant 8.000000e+00 : f32
    %70 = vector.broadcast %cst_25 : f32 to vector<1x16xf32>
    %71 = arith.divf %69, %70 : vector<1x16xf32>
    %72 = tpu.concatenate %66, %71 in 0 : vector<1x16xf32>, vector<1x16xf32> -> vector<2x16xf32>
    %73 = vector.broadcast %18 : vector<1x16xf32> to vector<2x16xf32>
    %74 = arith.mulf %73, %72 : vector<2x16xf32>
    %cst_26 = arith.constant dense<0.000000e+00> : vector<2xf32>
    %75 = vector.multi_reduction <add>, %74, %cst_26 [1] : vector<2x16xf32> to vector<2xf32>
    %76 = vector.shape_cast %75 : vector<2xf32> to vector<2x1xf32>
    %cst_27 = arith.constant dense<0xFF800000> : vector<1xf32>
    %77 = vector.multi_reduction <maximumf>, %76, %cst_27 [0] : vector<2x1xf32> to vector<1xf32>
    %78 = vector.shape_cast %77 : vector<1xf32> to vector<1x1xf32>
    %79 = vector.broadcast %78 : vector<1x1xf32> to vector<2x1xf32>
    %80 = arith.subf %76, %79 : vector<2x1xf32>
    %81 = math.exp %80 : vector<2x1xf32>
    %cst_28 = arith.constant dense<0.000000e+00> : vector<1xf32>
    %82 = vector.multi_reduction <add>, %81, %cst_28 [0] : vector<2x1xf32> to vector<1xf32>
    %83 = vector.shape_cast %82 : vector<1xf32> to vector<1x1xf32>
    %84 = vector.broadcast %83 : vector<1x1xf32> to vector<2x1xf32>
    %85 = arith.divf %81, %84 : vector<2x1xf32>
    %86 = vector.extract_strided_slice %85 {offsets = [0, 0], sizes = [1, 1], strides = [1, 1]} : vector<2x1xf32> to vector<1x1xf32>
    %87 = vector.broadcast %86 : vector<1x1xf32> to vector<24x32xf32>
    %88 = arith.mulf %87, %5 : vector<24x32xf32>
    %89 = arith.addf %4, %88 : vector<24x32xf32>
    %90 = vector.extract_strided_slice %85 {offsets = [1, 0], sizes = [1, 1], strides = [1, 1]} : vector<2x1xf32> to vector<1x1xf32>
    %91 = vector.broadcast %90 : vector<1x1xf32> to vector<24x32xf32>
    %92 = arith.mulf %91, %6 : vector<24x32xf32>
    %93 = arith.addf %89, %92 : vector<24x32xf32>
    %cst_29 = arith.constant dense<0.000000e+00> : vector<24x16xf32>
    %94 = tpu.matmul %93, %56, %cst_29 {dimension_numbers = #tpu.dot_dimension_numbers<[1], [0], [0], [1], [0, 0, 1, 1], [], []>} : vector<24x32xf32>, vector<32x16xf32>, vector<24x16xf32> -> vector<24x16xf32>
    %cst_30 = arith.constant 0.000000e+00 : f32
    %95 = vector.broadcast %cst_30 : f32 to vector<24x16xf32>
    %96 = arith.maximumf %94, %95 : vector<24x16xf32>
    %97 = vector.extract_strided_slice %7 {offsets = [0, 0], sizes = [24, 1], strides = [1, 1]} : vector<24x5xf32> to vector<24x1xf32>
    %98 = vector.broadcast %97 : vector<24x1xf32> to vector<24x16xf32>
    %99 = arith.mulf %96, %98 : vector<24x16xf32>
    %100 = vector.extract_strided_slice %7 {offsets = [0, 1], sizes = [24, 1], strides = [1, 1]} : vector<24x5xf32> to vector<24x1xf32>
    %101 = vector.broadcast %100 : vector<24x1xf32> to vector<24x16xf32>
    %102 = arith.mulf %96, %101 : vector<24x16xf32>
    %103 = vector.extract_strided_slice %7 {offsets = [0, 2], sizes = [24, 1], strides = [1, 1]} : vector<24x5xf32> to vector<24x1xf32>
    %104 = vector.broadcast %103 : vector<24x1xf32> to vector<24x16xf32>
    %105 = arith.mulf %96, %104 : vector<24x16xf32>
    %106 = vector.extract_strided_slice %7 {offsets = [0, 3], sizes = [24, 1], strides = [1, 1]} : vector<24x5xf32> to vector<24x1xf32>
    %107 = vector.broadcast %106 : vector<24x1xf32> to vector<24x16xf32>
    %108 = arith.mulf %96, %107 : vector<24x16xf32>
    %109 = vector.extract_strided_slice %7 {offsets = [0, 4], sizes = [24, 1], strides = [1, 1]} : vector<24x5xf32> to vector<24x1xf32>
    %110 = vector.broadcast %109 : vector<24x1xf32> to vector<24x16xf32>
    %111 = arith.mulf %96, %110 : vector<24x16xf32>
    %112 = tpu.concatenate %99, %102, %105, %108, %111 in 1 : vector<24x16xf32>, vector<24x16xf32>, vector<24x16xf32>, vector<24x16xf32>, vector<24x16xf32> -> vector<24x80xf32>
    %113 = vector.extract_strided_slice %2 {offsets = [136, 0], sizes = [80, 4], strides = [1, 1]} : vector<328x16xf32> to vector<80x4xf32>
    %114 = vector.extract_strided_slice %2 {offsets = [216, 0], sizes = [24, 4], strides = [1, 1]} : vector<328x16xf32> to vector<24x4xf32>
    %115 = vector.extract_strided_slice %2 {offsets = [240, 0], sizes = [32, 4], strides = [1, 1]} : vector<328x16xf32> to vector<32x4xf32>
    %116 = vector.extract_strided_slice %2 {offsets = [272, 0], sizes = [32, 4], strides = [1, 1]} : vector<328x16xf32> to vector<32x4xf32>
    %117 = vector.extract_strided_slice %2 {offsets = [304, 0], sizes = [4, 4], strides = [1, 1]} : vector<328x16xf32> to vector<4x4xf32>
    %118 = vector.extract_strided_slice %2 {offsets = [312, 0], sizes = [1, 4], strides = [1, 1]} : vector<328x16xf32> to vector<1x4xf32>
    %119 = vector.extract_strided_slice %2 {offsets = [320, 0], sizes = [1, 4], strides = [1, 1]} : vector<328x16xf32> to vector<1x4xf32>
    %cst_31 = arith.constant dense<0.000000e+00> : vector<24x4xf32>
    %120 = tpu.matmul %112, %113, %cst_31 {dimension_numbers = #tpu.dot_dimension_numbers<[1], [0], [0], [1], [0, 0, 1, 1], [], []>} : vector<24x80xf32>, vector<80x4xf32>, vector<24x4xf32> -> vector<24x4xf32>
    %121 = arith.addf %120, %114 : vector<24x4xf32>
    %cst_32 = arith.constant dense<0.000000e+00> : vector<32x4xf32>
    %122 = tpu.matmul %3, %121, %cst_32 {dimension_numbers = #tpu.dot_dimension_numbers<[1], [0], [0], [1], [0, 0, 1, 1], [], []>} : vector<32x24xf32>, vector<24x4xf32>, vector<32x4xf32> -> vector<32x4xf32>
    %123 = arith.mulf %122, %116 : vector<32x4xf32>
    %cst_33 = arith.constant dense<0.000000e+00> : vector<32xf32>
    %124 = vector.multi_reduction <add>, %123, %cst_33 [1] : vector<32x4xf32> to vector<32xf32>
    %125 = vector.shape_cast %124 : vector<32xf32> to vector<32x1xf32>
    %cst_34 = arith.constant dense<0.000000e+00> : vector<32x24xf32>
    %126 = tpu.matmul %115, %121, %cst_34 {dimension_numbers = #tpu.dot_dimension_numbers<[1], [1], [0], [0], [0, 0, 1, 0], [], []>} : vector<32x4xf32>, vector<24x4xf32>, vector<32x24xf32> -> vector<32x24xf32>
    %127 = vector.broadcast %125 : vector<32x1xf32> to vector<32x24xf32>
    %128 = arith.addf %127, %126 : vector<32x24xf32>
    %cst_35 = arith.constant 0.000000e+00 : f32
    %129 = vector.broadcast %cst_35 : f32 to vector<32x24xf32>
    %130 = arith.cmpf ogt, %128, %129 : vector<32x24xf32>
    %cst_36 = arith.constant 2.000000e-01 : f32
    %131 = vector.broadcast %cst_36 : f32 to vector<32x24xf32>
    %132 = arith.mulf %131, %128 : vector<32x24xf32>
    %133 = arith.select %130, %128, %132 : vector<32x24xi1>, vector<32x24xf32>
    %cst_37 = arith.constant -1.000000e+30 : f32
    %134 = vector.broadcast %cst_37 : f32 to vector<32x24xf32>
    %135 = arith.select %11, %133, %134 : vector<32x24xi1>, vector<32x24xf32>
    %cst_38 = arith.constant dense<0xFF800000> : vector<32xf32>
    %136 = vector.multi_reduction <maximumf>, %135, %cst_38 [1] : vector<32x24xf32> to vector<32xf32>
    %137 = vector.shape_cast %136 : vector<32xf32> to vector<32x1xf32>
    %cst_39 = arith.constant -1.000000e+29 : f32
    %138 = vector.broadcast %cst_39 : f32 to vector<32x1xf32>
    %139 = arith.cmpf olt, %137, %138 : vector<32x1xf32>
    %cst_40 = arith.constant 0.000000e+00 : f32
    %140 = vector.broadcast %cst_40 : f32 to vector<32x1xf32>
    %141 = arith.select %139, %140, %137 : vector<32x1xi1>, vector<32x1xf32>
    %142 = vector.broadcast %141 : vector<32x1xf32> to vector<32x24xf32>
    %143 = arith.subf %135, %142 : vector<32x24xf32>
    %144 = math.exp %143 : vector<32x24xf32>
    %cst_41 = arith.constant 0.000000e+00 : f32
    %145 = vector.broadcast %cst_41 : f32 to vector<32x24xf32>
    %146 = arith.select %11, %144, %145 : vector<32x24xi1>, vector<32x24xf32>
    %cst_42 = arith.constant dense<0.000000e+00> : vector<32xf32>
    %147 = vector.multi_reduction <add>, %146, %cst_42 [1] : vector<32x24xf32> to vector<32xf32>
    %148 = vector.shape_cast %147 : vector<32xf32> to vector<32x1xf32>
    %cst_43 = arith.constant 0.000000e+00 : f32
    %149 = vector.broadcast %cst_43 : f32 to vector<32x1xf32>
    %150 = arith.cmpf oeq, %148, %149 : vector<32x1xf32>
    %cst_44 = arith.constant 1.000000e+00 : f32
    %151 = vector.broadcast %cst_44 : f32 to vector<32x1xf32>
    %152 = arith.select %150, %151, %148 : vector<32x1xi1>, vector<32x1xf32>
    %153 = vector.broadcast %152 : vector<32x1xf32> to vector<32x24xf32>
    %154 = arith.divf %146, %153 : vector<32x24xf32>
    %cst_45 = arith.constant dense<0.000000e+00> : vector<32x4xf32>
    %155 = tpu.matmul %154, %121, %cst_45 {dimension_numbers = #tpu.dot_dimension_numbers<[1], [0], [0], [1], [0, 0, 1, 1], [], []>} : vector<32x24xf32>, vector<24x4xf32>, vector<32x4xf32> -> vector<32x4xf32>
    %cst_46 = arith.constant 0.000000e+00 : f32
    %156 = vector.broadcast %cst_46 : f32 to vector<32x4xf32>
    %157 = arith.maximumf %155, %156 : vector<32x4xf32>
    %158 = vector.extract_strided_slice %157 {offsets = [4, 0], sizes = [16, 4], strides = [1, 1]} : vector<32x4xf32> to vector<16x4xf32>
    %cst_47 = arith.constant dense<0.000000e+00> : vector<16x4xf32>
    %159 = tpu.matmul %158, %117, %cst_47 {dimension_numbers = #tpu.dot_dimension_numbers<[1], [0], [0], [1], [0, 0, 1, 1], [], []>} : vector<16x4xf32>, vector<4x4xf32>, vector<16x4xf32> -> vector<16x4xf32>
    %160 = vector.broadcast %118 : vector<1x4xf32> to vector<16x4xf32>
    %161 = arith.addf %159, %160 : vector<16x4xf32>
    %162 = math.tanh %161 : vector<16x4xf32>
    %163 = vector.extract_strided_slice %162 {offsets = [0, 0], sizes = [8, 4], strides = [1, 1]} : vector<16x4xf32> to vector<8x4xf32>
    %cst_48 = arith.constant dense<0.000000e+00> : vector<4xf32>
    %164 = vector.multi_reduction <add>, %163, %cst_48 [0] : vector<8x4xf32> to vector<4xf32>
    %165 = vector.shape_cast %164 : vector<4xf32> to vector<1x4xf32>
    %cst_49 = arith.constant 8.000000e+00 : f32
    %166 = vector.broadcast %cst_49 : f32 to vector<1x4xf32>
    %167 = arith.divf %165, %166 : vector<1x4xf32>
    %168 = vector.extract_strided_slice %162 {offsets = [8, 0], sizes = [8, 4], strides = [1, 1]} : vector<16x4xf32> to vector<8x4xf32>
    %cst_50 = arith.constant dense<0.000000e+00> : vector<4xf32>
    %169 = vector.multi_reduction <add>, %168, %cst_50 [0] : vector<8x4xf32> to vector<4xf32>
    %170 = vector.shape_cast %169 : vector<4xf32> to vector<1x4xf32>
    %cst_51 = arith.constant 8.000000e+00 : f32
    %171 = vector.broadcast %cst_51 : f32 to vector<1x4xf32>
    %172 = arith.divf %170, %171 : vector<1x4xf32>
    %173 = tpu.concatenate %167, %172 in 0 : vector<1x4xf32>, vector<1x4xf32> -> vector<2x4xf32>
    %174 = vector.broadcast %119 : vector<1x4xf32> to vector<2x4xf32>
    %175 = arith.mulf %174, %173 : vector<2x4xf32>
    %cst_52 = arith.constant dense<0.000000e+00> : vector<2xf32>
    %176 = vector.multi_reduction <add>, %175, %cst_52 [1] : vector<2x4xf32> to vector<2xf32>
    %177 = vector.shape_cast %176 : vector<2xf32> to vector<2x1xf32>
    %cst_53 = arith.constant dense<0xFF800000> : vector<1xf32>
    %178 = vector.multi_reduction <maximumf>, %177, %cst_53 [0] : vector<2x1xf32> to vector<1xf32>
    %179 = vector.shape_cast %178 : vector<1xf32> to vector<1x1xf32>
    %180 = vector.broadcast %179 : vector<1x1xf32> to vector<2x1xf32>
    %181 = arith.subf %177, %180 : vector<2x1xf32>
    %182 = math.exp %181 : vector<2x1xf32>
    %cst_54 = arith.constant dense<0.000000e+00> : vector<1xf32>
    %183 = vector.multi_reduction <add>, %182, %cst_54 [0] : vector<2x1xf32> to vector<1xf32>
    %184 = vector.shape_cast %183 : vector<1xf32> to vector<1x1xf32>
    %185 = vector.broadcast %184 : vector<1x1xf32> to vector<2x1xf32>
    %186 = arith.divf %182, %185 : vector<2x1xf32>
    %187 = vector.extract_strided_slice %186 {offsets = [0, 0], sizes = [1, 1], strides = [1, 1]} : vector<2x1xf32> to vector<1x1xf32>
    %188 = vector.broadcast %187 : vector<1x1xf32> to vector<24x32xf32>
    %189 = arith.mulf %188, %5 : vector<24x32xf32>
    %190 = arith.addf %4, %189 : vector<24x32xf32>
    %191 = vector.extract_strided_slice %186 {offsets = [1, 0], sizes = [1, 1], strides = [1, 1]} : vector<2x1xf32> to vector<1x1xf32>
    %192 = vector.broadcast %191 : vector<1x1xf32> to vector<24x32xf32>
    %193 = arith.mulf %192, %6 : vector<24x32xf32>
    %194 = arith.addf %190, %193 : vector<24x32xf32>
    %cst_55 = arith.constant dense<0.000000e+00> : vector<24x4xf32>
    %195 = tpu.matmul %194, %157, %cst_55 {dimension_numbers = #tpu.dot_dimension_numbers<[1], [0], [0], [1], [0, 0, 1, 1], [], []>} : vector<24x32xf32>, vector<32x4xf32>, vector<24x4xf32> -> vector<24x4xf32>
    %196 = vector.extract_strided_slice %195 {offsets = [16, 0], sizes = [8, 4], strides = [1, 1]} : vector<24x4xf32> to vector<8x4xf32>
    %cst_56 = arith.constant dense<0xFF800000> : vector<4xf32>
    %197 = vector.multi_reduction <maximumf>, %196, %cst_56 [0] : vector<8x4xf32> to vector<4xf32>
    %198 = vector.shape_cast %197 : vector<4xf32> to vector<1x4xf32>
    %199 = vector.broadcast %198 : vector<1x4xf32> to vector<8x4xf32>
    %200 = arith.subf %196, %199 : vector<8x4xf32>
    %201 = math.exp %200 : vector<8x4xf32>
    %cst_57 = arith.constant dense<0.000000e+00> : vector<4xf32>
    %202 = vector.multi_reduction <add>, %201, %cst_57 [0] : vector<8x4xf32> to vector<4xf32>
    %203 = vector.shape_cast %202 : vector<4xf32> to vector<1x4xf32>
    %204 = vector.broadcast %203 : vector<1x4xf32> to vector<8x4xf32>
    %205 = arith.divf %201, %204 : vector<8x4xf32>
    %c0_58 = arith.constant 0 : index
    %c0_59 = arith.constant 0 : index
    %206 = vector.load %arg3[%c0_58, %c0_59] : memref<8x4xf32, #tpu.memory_space<vmem>>, vector<8x4xf32>
    tpu.vector_store %arg3[%c0_58, %c0_59], %205 {strides = array<i32>} : memref<8x4xf32, #tpu.memory_space<vmem>>, vector<8x4xf32>,
    return
  }
}

</mosaic_0001>

<bundles_post_ra>
// kernel: forward.1
= control target key start
LH: loop header
LB: loop body
LE: loop exit
PB: predicated region body
PF: predicated region fallthrough
CT: control target
= control target key end

     0   :  { %vm92_vm0 = vcmask 1045504   ;;  %v2164_v0 = vmov 0.0|0.0   ;;  %vm2165_vm1 = vmmov 1   ;;  %vm2166_vm3 = vmmov 0   ;;  %s2173_s28 = smov 16   ;;  %s2174_s29 = smov 32   ;;  %s2638_s2 = inlined_call_operand.vmem [shape: f32[328,16], index: 2, kind: input, shape index: {}]   ;;  %s2639_s0 = inlined_call_operand.vmem [shape: f32[56,24], index: 0, kind: input, shape index: {}]   ;;  %s2640_s1 = inlined_call_operand.vmem [shape: f32[128,32], index: 1, kind: input, shape index: {}]   ;;  %s2641_s3 = inlined_call_operand.vmem [shape: f32[8,4], index: 3, kind: output, shape index: {}]  }
   0x1   :  { %2021 = vmatprep.subr.bf16.mxu0 %v2164_v0  ;;  %v37_v1 = vld [vmem:[%s2638_s2] sm:$0xff]  ;;  %v38_v2 = vld [vmem:[%s2638_s2 + $0x8] sm:$0xff]  ;;  %vm2023_vm2 = vmpackc.low %vm92_vm0, %vm2165_vm1  ;;  %v2167_v4 = vmov 0.0   ;;  %vm82_vm4 = vcmask 113664   ;;  %vm176_vm5 = vcmask 195584   ;;  %vm278_vm6 = vcmask 130048  }
   0x2   :  { %v2022_v3 = vpack.c.bf16 %v38_v2, %v37_v1  ;;  %1865 = vmatprep.mubr.msk.f32.mxu0 %vm2166_vm3, %v2167_v4  ;;  %v14_v5 = vld [vmem:[%s2639_s0] sm:$0xff]  ;;  %v15_v6 = vld [vmem:[%s2639_s0 + $0x8] sm:$0xff]  ;;  %v16_v7 = vld [vmem:[%s2639_s0 + $0x10] sm:$0xff]  ;;  %s2175_s30 = smov 48   ;;  %s2176_s4 = smov 64  }
   0x3   :  { %v2222_v8 = vld [vmem:[%s2640_s1] sm:$0xff]  ;;  %v42_v9 = vld [vmem:[%s2638_s2 + $0x28] sm:$0xff]  ;;  %v39_v12 = vld [vmem:[%s2638_s2 + $0x10] sm:$0xff] }
   0x4   :  { %2024 = vmatpush3.bf16.msk.msra.mxu0 %vm2023_vm2, %v2022_v3  ;;  %1880 = vmatprep.mubr.msk.f32.mxu1 %vm176_vm5, %v2222_v8  ;;  %v40_v13 = vld [vmem:[%s2638_s2 + $0x18] sm:$0xff]  ;;  %v41_v18 = vld [vmem:[%s2638_s2 + $0x20] sm:$0xff]  ;;  %vm2030_vm7 = vmpackc.low %vm278_vm6, %vm278_vm6 }
   0x5   :  { %v2245_v23 = vld [vmem:[%s2640_s1 + $0x8] sm:$0xff]  ;;  %v2250_v24 = vld [vmem:[%s2640_s1 + $0x10] sm:$0xff]  ;;  %v2259_v25 = vld [vmem:[%s2640_s1 + $0x18] sm:$0xff] }
   0x6   :  { %v43_v26 = vld [vmem:[%s2638_s2 + $0x30] sm:$0xff]  ;;  %v44_v27 = vld [vmem:[%s2638_s2 + $0x38] sm:$0xff]  ;;  %v45_v28 = vld [vmem:[%s2638_s2 + $0x40] sm:$0xff] }
   0x7   :  { %1866 = vmatmul.mubr.msk.f32.vlgmr.msra.gmra.mrb[0].mxu0 %vm82_vm4, %v14_v5  ;;  %v46_v29 = vld [vmem:[%s2638_s2 + $0x48] sm:$0xff]  ;;  %v47_v31 = vld [vmem:[%s2638_s2 + $0x50] sm:$0xff]  ;;  %v48_v34 = vld [vmem:[%s2638_s2 + $0x58] sm:$0xff] }
   0x8   :  { %1868 = vmatprep.mubr.msk.f32.mxu0 %vm2166_vm3, %v2167_v4  ;;  %v49_v38 = vld [vmem:[%s2638_s2 + $0x60] sm:$0xff]  ;;  %v2296_v50 = vld [vmem:[%s2639_s0 + $0x18] sm:$0xff]  ;;  %v2307_v54 = vld [vmem:[%s2639_s0 + $0x28] sm:$0xff] }
   0x9   :  { %vm78_vm8 = vcmp.gt.f32.partialorder %v2296_v50, 0.0  ;;  %v2302_v53 = vld [vmem:[%s2639_s0 + $0x20] sm:$0xff]  ;;  %vm80_vm11 = vcmp.gt.f32.partialorder %v2307_v54, 0.0  ;;  %v2316_v61 = vld [vmem:[%s2639_s0 + $0x30] sm:$0xff] }
   0xa   :  { %vm79_vm10 = vcmp.gt.f32.partialorder %v2302_v53, 0.0  ;;  %vm81_vm14 = vcmp.gt.f32.partialorder %v2316_v61, 0.0 }
   0xb   :  { %1869 = vmatmul.mubr.msk.f32.gmra.mrb[2].mxu0 %vm82_vm4, %v15_v6 }
   0xc   :  { %1871 = vmatprep.mubr.msk.f32.mxu0 %vm2166_vm3, %v2167_v4 }
   0xf   :  { %1872 = vmatmul.mubr.msk.f32.gmra.mrb[4].mxu0 %vm82_vm4, %v16_v7 }
  0x10   :  { %1892 = vmatprep.mubr.msk.f32.mxu0 %vm278_vm6, %v42_v9 }
  0xda   :  { %v162_v10 = vpop.f32.mrb[0].mxu0 }
  0xdb   :  { %v1867_v11 = vpop.f32.mrb[1].mxu0  ;;  %v163_v15 = vadd.f32 %v162_v10, %v39_v12 }
  0xde   :  { %v167_v14 = vpop.f32.mrb[2].mxu0 }
  0xdf   :  { %v168_v16 = vadd.f32 %v167_v14, %v40_v13  ;;  %v1870_v17 = vpop.f32.mrb[3].mxu0 }
  0xe1   :  { %v2025_v19 = vpack.c.bf16 %v168_v16, %v163_v15 }
  0xe2   :  { %v172_v20 = vpop.f32.mrb[4].mxu0 }
  0xe3   :  { %v173_v21 = vadd.f32 %v172_v20, %v41_v18  ;;  %2026 = vmatprep.subr.bf16.mxu1 %v2025_v19  ;;  %2031 = vmatprep.subr.msk.bf16.mxu0 %vm2030_vm7, %v2025_v19  ;;  %v1873_v22 = vpop.f32.mrb[5].mxu0 }
  0xe4   :  { %2028 = vmatpush3.bf16.msra.mxu1 %v2025_v19  ;;  %2034 = vmatpush3.bf16.xpose.msk.msra.mxu0 %vm2030_vm7, %v2025_v19 }
  0xe5   :  { %1878 = vmatprep.subr.mxu1 %v173_v21  ;;  %1890 = vmatprep.subr.msk.mxu0 %vm278_vm6, %v173_v21 }
  0xe8   :  { %1879 = vmatpush3.msra.mxu1 %v173_v21 }
  0xe9   :  { %1881 = vmatmul.mubr.msk.f32.vlgmr.msra.gmra.mrb[0].mxu1 %vm176_vm5, %v2245_v23 }
  0xea   :  { %1883 = vmatprep.mubr.msk.f32.mxu1 %vm176_vm5, %v2250_v24 }
  0xec   :  { %1891 = vmatpush3.xpose.msk.msra.mxu0 %vm278_vm6, %v173_v21 }
  0xed   :  { %1884 = vmatmul.mubr.msk.f32.gmra.mrb[2].mxu1 %vm176_vm5, %v2259_v25  ;;  %2036 = vmatprep.subr.bf16.mxu0 %v2025_v19 }
  0xef   :  { %1893 = vmatmul.mubr.msk.f32.vlgmr.msra.gmra.mrb[6].mxu0 %vm278_vm6, %v43_v26 }
  0xf0   :  { %2038 = vmatpush3.bf16.msra.mxu0 %v2025_v19  ;;  %1895 = vmatprep.mubr.msk.f32.mxu0 %vm278_vm6, %v44_v27 }
  0xf1   :  { %1902 = vmatprep.subr.mxu0 %v173_v21 }
  0xf3   :  { %1896 = vmatmul.mubr.msk.f32.gmra.mrb[8].mxu0 %vm278_vm6, %v45_v28 }
  0xf4   :  { %1903 = vmatpush3.msra.mxu0 %v173_v21 }
  0xf5   :  { %2043 = vmatprep.subr.bf16.mxu0 %v2164_v0 }
 0x1bc   :  { %v1882_v30 = vpop.f32.mrb[0].mxu1 }
 0x1bd   :  { %v255_v32 = vpop.f32.mrb[1].mxu1  ;;  %v275_v35 = vmul.f32 %v1882_v30, %v47_v31 }
 0x1be   :  { %v274_v33 = vmul.f32 %v255_v32, %v46_v29 }
 0x1bf   :  { %v282_v43 = vsel %vm278_vm6, %v275_v35, 0.0 }
 0x1c0   :  { %v1885_v36 = vpop.f32.mrb[2].mxu1  ;;  %v279_v37 = vsel %vm278_vm6, %v274_v33, 0.0 }
 0x1c1   :  { %280 = vadd.xlane.f32.xlu0 %v279_v37  ;;  %v265_v39 = vpop.f32.mrb[3].mxu1  ;;  %v277_v42 = vmul.f32 %v1885_v36, %v49_v38 }
 0x1c2   :  { %v276_v40 = vmul.f32 %v265_v39, %v48_v34  ;;  %v1894_v41 = vpop.f32.mrb[6].mxu0 }
 0x1c3   :  { %v288_v45 = vsel %vm278_vm6, %v277_v42, 0.0  ;;  %v378_v46 = vpop.f32.mrb[7].mxu0 }
 0x1c4   :  { %v285_v44 = vsel %vm278_vm6, %v276_v40, 0.0 }
 0x1c5   :  { %283 = vadd.xlane.f32.xlu0 %v282_v43  ;;  %286 = vadd.xlane.f32.xlu1 %v285_v44 }
 0x1c6   :  { %v1897_v47 = vpop.f32.mrb[8].mxu0 }
 0x1c7   :  { %v388_v48 = vpop.f32.mrb[9].mxu0 }
 0x1c9   :  { %289 = vadd.xlane.f32.xlu1 %v288_v45 }
 0x24e   :  { %v281_v49 = vpop.xlane.xlu0 %280 }
 0x24f   :  { %v397_v51 = vadd.f32 %v378_v46, %v281_v49 }
 0x251   :  { %v405_v52 = vmul.f32 0.2, %v397_v51  ;;  %vm401_vm9 = vcmp.gt.f32.partialorder %v397_v51, 0.0 }
 0x252   :  { %v284_v55 = vpop.xlane.xlu0 %283  ;;  %v287_v56 = vpop.xlane.xlu1 %286 }
 0x253   :  { %v398_v57 = vadd.f32 %v1894_v41, %v284_v55  ;;  %v399_v58 = vadd.f32 %v388_v48, %v287_v56  ;;  %v409_v59 = vsel %vm401_vm9, %v397_v51, %v405_v52 }
 0x254   :  { %v413_v60 = vsel %vm78_vm8, %v409_v59, -1e+30 }
 0x255   :  { %v406_v62 = vmul.f32 0.2, %v398_v57  ;;  %v407_v63 = vmul.f32 0.2, %v399_v58  ;;  %v417_v1 = vsel %vm176_vm5, %v413_v60, -inf  ;;  %vm402_vm12 = vcmp.gt.f32.partialorder %v398_v57, 0.0 }
 0x256   :  { %v290_v2 = vpop.xlane.xlu1 %289  ;;  %418 = vmax.xlane.f32.xlu0 %v417_v1  ;;  %vm403_vm13 = vcmp.gt.f32.partialorder %v399_v58, 0.0 }
 0x257   :  { %v400_v3 = vadd.f32 %v1897_v47, %v290_v2  ;;  %v410_v5 = vsel %vm402_vm12, %v398_v57, %v406_v62  ;;  %v411_v6 = vsel %vm403_vm13, %v399_v58, %v407_v63 }
 0x258   :  { %v414_v7 = vsel %vm79_vm10, %v410_v5, -1e+30  ;;  %v415_v9 = vsel %vm80_vm11, %v411_v6, -1e+30  ;;  %v50_v5 = vld [vmem:[%s2638_s2 + $0x68] sm:$0xff]  ;;  %v51_v6 = vld [vmem:[%s2638_s2 + $0x70] sm:$0xff] }
 0x259   :  { %v408_v10 = vmul.f32 0.2, %v400_v3  ;;  %v420_v11 = vsel %vm176_vm5, %v414_v7, -inf  ;;  %v423_v12 = vsel %vm176_vm5, %v415_v9, -inf  ;;  %vm404_vm15 = vcmp.gt.f32.partialorder %v400_v3, 0.0 }
 0x25a   :  { %421 = vmax.xlane.f32.xlu1 %v420_v11  ;;  %424 = vmax.xlane.f32.xlu0 %v423_v12 }
 0x25b   :  { %v412_v13 = vsel %vm404_vm15, %v400_v3, %v408_v10  ;;  %vm589_vm15 = vcmask 1043456  }
 0x25c   :  { %v416_v14 = vsel %vm81_vm14, %v412_v13, -1e+30 }
 0x25d   :  { %v426_v15 = vsel %vm176_vm5, %v416_v14, -inf }
 0x25e   :  { %427 = vmax.xlane.f32.xlu1 %v426_v15 }
 0x2e3   :  { %v419_v16 = vpop.xlane.xlu0 %418 }
 0x2e4   :  { %vm429_vm0 = vcmp.lt.f32.partialorder %v419_v16, -1e+29 }
 0x2e5   :  { %v433_v17 = vsel %vm429_vm0, 0.0, %v419_v16  ;;  %vm693_vm0 = vcmask 1040384  }
 0x2e6   :  { %v437_v18 = vsub.f32 %v413_v60, %v433_v17 }
 0x2e7   :  { %v422_v19 = vpop.xlane.xlu1 %421  ;;  %v425_v20 = vpop.xlane.xlu0 %424 }
 0x2e8   :  { %v441_v21 = vmul.f32 1.442695, %v437_v18  ;;  %vm430_vm1 = vcmp.lt.f32.partialorder %v422_v19, -1e+29  ;;  %vm431_vm2 = vcmp.lt.f32.partialorder %v425_v20, -1e+29 }
 0x2e9   :  { %v434_v22 = vsel %vm430_vm1, 0.0, %v422_v19  ;;  %v435_v26 = vsel %vm431_vm2, 0.0, %v425_v20  ;;  %vm700_vm1 = vcmask 123904   ;;  %vm704_vm2 = vcmask 1041408  }
 0x2ea   :  { %2112 = vpow2.f32 %v441_v21  ;;  %v438_v27 = vsub.f32 %v414_v7, %v434_v22  ;;  %v439_v28 = vsub.f32 %v415_v9, %v435_v26  ;;  %v2039_v7 = vpack.c.bf16 %v51_v6, %v50_v5  ;;  %v36_v5 = vld [vmem:[%s2640_s1 + $0x78] sm:$0xff] }
 0x2eb   :  { %v428_v29 = vpop.xlane.xlu1 %427  ;;  %v2171_v6 = vmov 4  }
 0x2ec   :  { %v443_v30 = vmul.f32 1.442695, %v438_v27  ;;  %v445_v31 = vmul.f32 1.442695, %v439_v28  ;;  %vm432_vm4 = vcmp.lt.f32.partialorder %v428_v29, -1e+29  ;;  %2040 = vmatprep.subr.bf16.mxu1 %v2039_v7  ;;  %v582_v27 = vlaneseq }
 0x2ed   :  { %v436_v32 = vsel %vm432_vm4, 0.0, %v428_v29  ;;  %2042 = vmatpush3.bf16.msra.mxu1 %v2039_v7  ;;  %v35_v7 = vld [vmem:[%s2640_s1 + $0x70] sm:$0xff]  ;;  %vm744_vm4 = vcmask 261120  }
 0x2ee   :  { %2114 = vpow2.f32 %v443_v30  ;;  %v440_v33 = vsub.f32 %v416_v14, %v436_v32  ;;  %2049 = vmatprep.subr.bf16.mxu1 %v2164_v0  ;;  %v2361_v28 = vshrl.u32 %v582_v27, 7  ;;  %v52_v30 = vld [vmem:[%s2638_s2 + $0x78] sm:$0xff] }
 0x2ef   :  { %2116 = vpow2.f32 %v445_v31 }
 0x2f0   :  { %v447_v34 = vmul.f32 1.442695, %v440_v33  ;;  %v2364_v29 = vsub.s32 0, %v2361_v28 }
 0x2f2   :  { %2118 = vpow2.f32 %v447_v34  ;;  %v585_v31 = vrot.slane %v52_v30, %v2364_v29 }
 0x2f4   :  { %v2113_v35 = vpop.eup %2112 }
 0x2f5   :  { %v449_v36 = vsel %vm78_vm8, %v2113_v35, 0.0 }
 0x2f6   :  { %v453_v37 = vsel %vm176_vm5, %v449_v36, 0.0 }
 0x2f7   :  { %454 = vadd.xlane.f32.xlu0 %v453_v37 }
 0x2f8   :  { %v2115_v38 = vpop.eup %2114 }
 0x2f9   :  { %v2117_v39 = vpop.eup %2116  ;;  %v450_v40 = vsel %vm79_vm10, %v2115_v38, 0.0 }
 0x2fa   :  { %v456_v41 = vsel %vm176_vm5, %v450_v40, 0.0  ;;  %v451_v42 = vsel %vm80_vm11, %v2117_v39, 0.0 }
 0x2fb   :  { %457 = vadd.xlane.f32.xlu1 %v456_v41  ;;  %v459_v43 = vsel %vm176_vm5, %v451_v42, 0.0 }
 0x2fc   :  { %v2119_v44 = vpop.eup %2118  ;;  %460 = vadd.xlane.f32.xlu0 %v459_v43 }
 0x2fd   :  { %v452_v45 = vsel %vm81_vm14, %v2119_v44, 0.0 }
 0x2fe   :  { %v462_v46 = vsel %vm176_vm5, %v452_v45, 0.0 }
 0x2ff   :  { %463 = vadd.xlane.f32.xlu1 %v462_v46 }
 0x384   :  { %v455_v47 = vpop.xlane.xlu0 %454 }
 0x385   :  { %vm465_vm7 = vcmp.eq.f32.partialorder %v455_v47, 0.0 }
 0x386   :  { %v469_v48 = vsel %vm465_vm7, 1.0, %v455_v47  ;;  %vm969_vm7 = vcmask 392192  }
 0x387   :  { %2120 = vrcp.f32 %v469_v48 }
 0x388   :  { %v458_v49 = vpop.xlane.xlu1 %457 }
 0x389   :  { %vm466_vm9 = vcmp.eq.f32.partialorder %v458_v49, 0.0  ;;  %v461_v51 = vpop.xlane.xlu0 %460 }
 0x38a   :  { %v470_v52 = vsel %vm466_vm9, 1.0, %v458_v49  ;;  %vm467_vm12 = vcmp.eq.f32.partialorder %v461_v51, 0.0  ;;  %v53_v49 = vld [vmem:[%s2638_s2 + $0x80] sm:$0xff]  ;;  %vm973_vm9 = vcmask 523264  }
 0x38b   :  { %2122 = vrcp.f32 %v470_v52  ;;  %v471_v55 = vsel %vm467_vm12, 1.0, %v461_v51  ;;  %vm977_vm12 = vcmask 654336  }
 0x38c   :  { %2124 = vrcp.f32 %v471_v55  ;;  %v464_v56 = vpop.xlane.xlu1 %463 }
 0x38d   :  { %vm468_vm13 = vcmp.eq.f32.partialorder %v464_v56, 0.0 }
 0x38e   :  { %v472_v57 = vsel %vm468_vm13, 1.0, %v464_v56 }
 0x38f   :  { %2126 = vrcp.f32 %v472_v57  ;;  %v698_v57 = vrot.slane %v53_v49, %v2364_v29 }
 0x391   :  { %v2121_v58 = vpop.eup %2120 }
 0x392   :  { %v474_v59 = vmul.f32 %v2121_v58, %v449_v36 }
 0x394   :  { %1904 = vmatprep.mubr.msk.f32.mxu0 %vm176_vm5, %v474_v59 }
 0x395   :  { %v2123_v60 = vpop.eup %2122 }
 0x396   :  { %v2125_v62 = vpop.eup %2124  ;;  %v476_v63 = vmul.f32 %v2123_v60, %v450_v40 }
 0x397   :  { %v478_v1 = vmul.f32 %v2125_v62, %v451_v42 }
 0x398   :  { %1905 = vmatmul.mubr.msk.f32.vlgmr.msra.gmra.mrb[10].mxu0 %vm176_vm5, %v476_v63  ;;  %v34_v63 = vld [vmem:[%s2640_s1 + $0x68] sm:$0xff] }
 0x399   :  { %v2127_v2 = vpop.eup %2126  ;;  %1907 = vmatprep.mubr.msk.f32.mxu0 %vm176_vm5, %v478_v1  ;;  %v2168_v1 = vmov 1  }
 0x39a   :  { %v480_v3 = vmul.f32 %v2127_v2, %v452_v45  ;;  %2097 = vset.pattern.permute.xlu1 %v2168_v1  ;;  %v2169_v2 = vmov 2  }
 0x39b   :  { %2098 = vset.pattern.permute.xlu0 %v2169_v2  ;;  %856 = vperm.xlu1 %2097, %v34_v63  }
 0x39c   :  { %1908 = vmatmul.mubr.msk.f32.gmra.mrb[12].mxu0 %vm176_vm5, %v480_v3  ;;  %v2170_v3 = vmov 3  }
 0x39d   :  { %1925 = vmatprep.mubr.msk.f32.mxu0 %vm2166_vm3, %v2167_v4 }
 0x39f   :  { %2099 = vset.pattern.permute.xlu1 %v2170_v3 }
 0x3a0   :  { %886 = vperm.xlu1 %2099, %v34_v63  }
 0x3a4   :  { %2100 = vset.pattern.permute.xlu1 %v2171_v6 }
 0x3a5   :  { %901 = vperm.xlu1 %2100, %v34_v63  }
 0x3a9   :  { %2101 = vset.pattern.permute.xlu1 %v2168_v1 }
 0x3aa   :  { %860 = vperm.xlu1 %2101, %v35_v7  }
 0x3ae   :  { %2102 = vset.pattern.permute.xlu1 %v2169_v2 }
 0x3af   :  { %875 = vperm.xlu1 %2102, %v35_v7  }
 0x3b3   :  { %2103 = vset.pattern.permute.xlu1 %v2170_v3 }
 0x3b4   :  { %890 = vperm.xlu1 %2103, %v35_v7  }
 0x3b8   :  { %2104 = vset.pattern.permute.xlu1 %v2171_v6 }
 0x3b9   :  { %905 = vperm.xlu1 %2104, %v35_v7  }
 0x3bd   :  { %2105 = vset.pattern.permute.xlu1 %v2168_v1  ;;  %v55_v1 = vld [vmem:[%s2638_s2 + $0x90] sm:$0xff] }
 0x3be   :  { %864 = vperm.xlu1 %2105, %v36_v5  }
 0x3c2   :  { %2106 = vset.pattern.permute.xlu1 %v2169_v2  ;;  %v56_v2 = vld [vmem:[%s2638_s2 + $0x98] sm:$0xff] }
 0x3c3   :  { %879 = vperm.xlu1 %2106, %v36_v5  }
 0x3c7   :  { %2108 = vset.pattern.permute.xlu1 %v2171_v6 }
 0x3c8   :  { %909 = vperm.xlu1 %2108, %v36_v5  }
 0x46b   :  { %v1906_v9 = vpop.f32.mrb[10].mxu0 }
 0x46c   :  { %v579_v10 = vmax.f32 %v1906_v9, 0.0  ;;  %v559_v11 = vpop.f32.mrb[11].mxu0  ;;  %v2172_v9 = vmov 0  }
 0x46d   :  { %v578_v12 = vmax.f32 %v559_v11, 0.0  ;;  %2109 = vset.pattern.permute.xlu1 %v2172_v9 }
 0x46e   :  { %v591_v13 = vrot.slane %v579_v10, 4  ;;  %839 = vperm.xlu1 %2109, %v34_v63  }
 0x46f   :  { %v590_v14 = vrot.slane %v578_v12, 4  ;;  %v2044_v15 = vpack.c.bf16 %v579_v10, %v578_v12  ;;  %v1909_v16 = vpop.f32.mrb[12].mxu0 }
 0x470   :  { %v581_v17 = vmax.f32 %v1909_v16, 0.0  ;;  %v569_v18 = vpop.f32.mrb[13].mxu0 }
 0x471   :  { %v580_v19 = vmax.f32 %v569_v18, 0.0  ;;  %2045 = vmatpush3.bf16.msra.mxu0 %v2044_v15  ;;  %v592_v20 = vsel %vm589_vm15, %v590_v14, %v591_v13 }
 0x472   :  { %1914 = vmatprep.mubr.msk.f32.mxu1 %vm278_vm6, %v592_v20  ;;  %2046 = vmatprep.subr.bf16.mxu0 %v2164_v0 }
 0x473   :  { %v593_v21 = vrot.slane %v580_v19, 4  ;;  %v2047_v22 = vpack.c.bf16 %v581_v17, %v580_v19  ;;  %849 = vperm.xlu1 %2109, %v36_v5  }
 0x475   :  { %v594_v26 = vsel %vm589_vm15, %v591_v13, %v593_v21  ;;  %2048 = vmatpush3.bf16.msra.mxu0 %v2047_v22 }
 0x476   :  { %1915 = vmatmul.mubr.msk.f32.vlgmr.msra.gmra.mrb[4].mxu1 %vm278_vm6, %v594_v26 }
 0x477   :  { %1954 = vmatprep.mubr.msk.f32.mxu1 %vm2166_vm3, %v2167_v4 }
 0x549   :  { %v1916_v32 = vpop.f32.mrb[4].mxu1 }
 0x54a   :  { %v671_v33 = vadd.f32 %v1916_v32, %v585_v31  ;;  %v665_v34 = vpop.f32.mrb[5].mxu1 }
 0x54b   :  { %v666_v35 = vadd.f32 %v665_v34, %v585_v31 }
 0x54c   :  { %2128 = vtanh.f32 %v671_v33  ;;  %v736_v33 = vsub.s32 1, %v2361_v28 }
 0x54d   :  { %2130 = vtanh.f32 %v666_v35 }
 0x556   :  { %v2129_v36 = vpop.eup %2128 }
 0x557   :  { %v2131_v37 = vpop.eup %2130  ;;  %v685_v38 = vsel %vm278_vm6, %v2129_v36, 0.0  ;;  %v2392_v36 = vld [vmem:[%s2640_s1 + $0x38] sm:$0xff] }
 0x558   :  { %v686_v39 = vrot.slane %v685_v38, 4  ;;  %v676_v40 = vsel %vm278_vm6, %v2131_v37, 0.0  ;;  %v2397_v37 = vld [vmem:[%s2640_s1 + $0x40] sm:$0xff] }
 0x559   :  { %v677_v41 = vrot.slane %v676_v40, 4 }
 0x55a   :  { %v687_v42 = vadd.f32 %v686_v39, %v685_v38 }
 0x55b   :  { %v678_v43 = vadd.f32 %v677_v41, %v676_v40  ;;  %v2405_v40 = vld [vmem:[%s2640_s1 + $0x20] sm:$0xff]  ;;  %v2410_v41 = vld [vmem:[%s2640_s1 + $0x50] sm:$0xff] }
 0x55c   :  { %v688_v44 = vrot.slane %v687_v42, 2 }
 0x55d   :  { %v679_v45 = vrot.slane %v678_v43, 2 }
 0x55e   :  { %v689_v46 = vadd.f32 %v688_v44, %v687_v42  ;;  %v2417_v44 = vld [vmem:[%s2640_s1 + $0x28] sm:$0xff] }
 0x55f   :  { %v680_v47 = vadd.f32 %v679_v45, %v678_v43  ;;  %v2422_v45 = vld [vmem:[%s2640_s1 + $0x48] sm:$0xff] }
 0x560   :  { %v690_v48 = vrot.slane %v689_v46, 1 }
 0x561   :  { %v681_v51 = vrot.slane %v680_v47, 1 }
 0x562   :  { %v691_v52 = vadd.f32 %v690_v48, %v689_v46  ;;  %v2429_v48 = vld [vmem:[%s2640_s1 + $0x58] sm:$0xff] }
 0x563   :  { %v682_v55 = vadd.f32 %v681_v51, %v680_v47 }
 0x564   :  { %v692_v56 = vmul.f32 0.125, %v691_v52 }
 0x565   :  { %v684_v58 = vmul.f32 0.125, %v682_v55  ;;  %v2436_v55 = vld [vmem:[%s2640_s1 + $0x30] sm:$0xff] }
 0x567   :  { %v694_v59 = vsel %vm693_vm0, %v684_v58, %v692_v56 }
 0x568   :  { %v699_v60 = vmul.f32 %v698_v57, %v694_v59  ;;  %v2445_v57 = vld [vmem:[%s2640_s1 + $0x60] sm:$0xff] }
 0x56a   :  { %v701_v62 = vsel %vm700_vm1, %v699_v60, 0.0 }
 0x56b   :  { %702 = vadd.xlane.f32.xlu0 %v701_v62 }
 0x581   :  { %871 = vperm.xlu0 %2098, %v34_v63   ;;  %v54_v63 = vld [vmem:[%s2638_s2 + $0x88] sm:$0xff] }
 0x585   :  { %2107 = vset.pattern.permute.xlu0 %v2170_v3  ;;  %v2050_v3 = vpack.c.bf16 %v55_v1, %v54_v63 }
 0x586   :  { %894 = vperm.xlu0 %2107, %v36_v5   ;;  %v57_v5 = vld [vmem:[%s2638_s2 + $0xa0] sm:$0xff] }
 0x587   :  { %2051 = vmatpush3.bf16.msra.mxu1 %v2050_v3 }
 0x588   :  { %2052 = vmatprep.subr.bf16.mxu1 %v2164_v0 }
 0x58a   :  { %2110 = vset.pattern.permute.xlu0 %v2172_v9 }
 0x58b   :  { %844 = vperm.xlu0 %2110, %v35_v7   ;;  %v59_v7 = vld [vmem:[%s2638_s2 + $0xb0] sm:$0xff] }
 0x58f   :  { %2111 = vset.pattern.permute.xlu0 %v2171_v6  ;;  %v2053_v6 = vpack.c.bf16 %v57_v5, %v56_v2 }
 0x591   :  { %2054 = vmatpush3.bf16.msra.mxu1 %v2053_v6 }
 0x592   :  { %2055 = vmatprep.subr.bf16.mxu1 %v2164_v0 }
 0x5f8   :  { %v703_v10 = vpop.xlane.xlu0 %702 }
 0x5f9   :  { %v705_v11 = vsel %vm704_vm2, %v703_v10, -inf }
 0x5fa   :  { %v706_v12 = vrot.slane %v705_v11, 4 }
 0x5fc   :  { %v707_v13 = vmax.f32 %v705_v11, %v706_v12  ;;  %v61_v11 = vld [vmem:[%s2638_s2 + $0xc0] sm:$0xff] }
 0x5fe   :  { %v708_v14 = vrot.slane %v707_v13, 2 }
 0x600   :  { %v709_v15 = vmax.f32 %v707_v13, %v708_v14  ;;  %v857_v13 = vpop.permute.xlu1 %856 }
 0x602   :  { %v710_v16 = vrot.slane %v709_v15, 1 }
 0x604   :  { %v711_v17 = vmax.f32 %v709_v15, %v710_v16  ;;  %v887_v14 = vpop.permute.xlu1 %886 }
 0x606   :  { %v712_v18 = vsub.f32 %v703_v10, %v711_v17  ;;  %v60_v10 = vld [vmem:[%s2638_s2 + $0xb8] sm:$0xff] }
 0x607   :  { %v2059_v12 = vpack.c.bf16 %v61_v11, %v60_v10 }
 0x608   :  { %v713_v19 = vmul.f32 1.442695, %v712_v18  ;;  %v902_v15 = vpop.permute.xlu1 %901  ;;  %v62_v18 = vld [vmem:[%s2638_s2 + $0xc8] sm:$0xff] }
 0x60a   :  { %2132 = vpow2.f32 %v713_v19  ;;  %v63_v19 = vld [vmem:[%s2638_s2 + $0xd0] sm:$0xff] }
 0x60c   :  { %v861_v16 = vpop.permute.xlu1 %860 }
 0x610   :  { %v876_v17 = vpop.permute.xlu1 %875 }
 0x614   :  { %v2133_v20 = vpop.eup %2132 }
 0x615   :  { %v715_v21 = vsel %vm704_vm2, %v2133_v20, 0.0 }
 0x616   :  { %v716_v22 = vrot.slane %v715_v21, 4 }
 0x618   :  { %v717_v26 = vadd.f32 %v716_v22, %v715_v21  ;;  %v891_v21 = vpop.permute.xlu1 %890 }
 0x61a   :  { %v718_v27 = vrot.slane %v717_v26, 2 }
 0x61c   :  { %v719_v30 = vadd.f32 %v718_v27, %v717_v26 }
 0x61e   :  { %v720_v31 = vrot.slane %v719_v30, 1 }
 0x620   :  { %v721_v32 = vadd.f32 %v720_v31, %v719_v30  ;;  %v872_v30 = vpop.permute.xlu0 %871 }
 0x622   :  { %2134 = vrcp.f32 %v721_v32 }
 0x624   :  { %v895_v2 = vpop.permute.xlu0 %894 }
 0x62c   :  { %v2135_v34 = vpop.eup %2134 }
 0x62d   :  { %v723_v35 = vmul.f32 %v2135_v34, %v2133_v20  ;;  %v2062_v20 = vpack.c.bf16 %v63_v19, %v62_v18  ;;  %v906_v34 = vpop.permute.xlu1 %905 }
 0x62f   :  { %v727_v38 = vrot.slane %v723_v35, %v2364_v29  ;;  %v737_v39 = vrot.slane %v723_v35, %v736_v33 }
 0x631   :  { %v728_v42 = vmul.f32 %v727_v38, %v2392_v36  ;;  %v729_v43 = vmul.f32 %v727_v38, %v2397_v37  ;;  %v738_v47 = vmul.f32 %v737_v39, %v2410_v41  ;;  %v730_v52 = vmul.f32 %v727_v38, %v2422_v45 }
 0x632   :  { %v739_v56 = vmul.f32 %v737_v39, %v2429_v48  ;;  %v740_v60 = vmul.f32 %v737_v39, %v2445_v57 }
 0x633   :  { %v731_v46 = vadd.f32 %v728_v42, %v2405_v40  ;;  %v732_v51 = vadd.f32 %v729_v43, %v2417_v44  ;;  %v733_v59 = vadd.f32 %v730_v52, %v2436_v55 }
 0x635   :  { %v741_v49 = vadd.f32 %v738_v47, %v731_v46  ;;  %v742_v58 = vadd.f32 %v739_v56, %v732_v51  ;;  %v743_v62 = vadd.f32 %v740_v60, %v733_v59 }
 0x637   :  { %1926 = vmatmul.mubr.msk.f32.vlgmr.msra.gmra.mrb[14].mxu0 %vm744_vm4, %v741_v49  ;;  %v865_v49 = vpop.permute.xlu1 %864 }
 0x638   :  { %1928 = vmatprep.mubr.msk.f32.mxu0 %vm2166_vm3, %v2167_v4 }
 0x63b   :  { %1929 = vmatmul.mubr.msk.f32.gmra.mrb[16].mxu0 %vm744_vm4, %v742_v58  ;;  %v880_v60 = vpop.permute.xlu1 %879 }
 0x63c   :  { %1931 = vmatprep.mubr.msk.f32.mxu0 %vm2166_vm3, %v2167_v4 }
 0x63f   :  { %1932 = vmatmul.mubr.msk.f32.gmra.mrb[18].mxu0 %vm744_vm4, %v743_v62  ;;  %v910_v1 = vpop.permute.xlu1 %909 }
 0x640   :  { %1969 = vmatprep.mubr.msk.f32.mxu0 %vm176_vm5, %v2222_v8  ;;  %v58_v8 = vld [vmem:[%s2638_s2 + $0xa8] sm:$0xff] }
 0x641   :  { %v2056_v9 = vpack.c.bf16 %v59_v7, %v58_v8  ;;  %v845_v8 = vpop.permute.xlu0 %844 }
 0x643   :  { %2057 = vmatpush3.bf16.msra.mxu1 %v2056_v9  ;;  %v840_v6 = vpop.permute.xlu1 %839 }
 0x644   :  { %2058 = vmatprep.subr.bf16.mxu1 %v2164_v0 }
 0x647   :  { %2060 = vmatpush3.bf16.msra.mxu1 %v2059_v12  ;;  %v850_v7 = vpop.permute.xlu1 %849 }
 0x648   :  { %2061 = vmatprep.subr.bf16.mxu1 %v2164_v0 }
 0x64b   :  { %2063 = vmatpush3.bf16.msra.mxu1 %v2062_v20 }
 0x70a   :  { %v820_v22 = vpop.f32.mrb[14].mxu0 }
 0x70b   :  { %v834_v26 = vmax.f32 %v820_v22, 0.0  ;;  %v1927_v27 = vpop.f32.mrb[15].mxu0 }
 0x70d   :  { %v867_v31 = vmul.f32 %v857_v13, %v834_v26  ;;  %v882_v32 = vmul.f32 %v872_v30, %v834_v26  ;;  %v897_v42 = vmul.f32 %v887_v14, %v834_v26  ;;  %v912_v43 = vmul.f32 %v902_v15, %v834_v26 }
 0x70e   :  { %v825_v35 = vpop.f32.mrb[16].mxu0  ;;  %v852_v9 = vmul.f32 %v840_v6, %v834_v26  ;;  %v67_v6 = vld [vmem:[%s2638_s2 + $0xf0] sm:$0xff] }
 0x70f   :  { %918 = vrot.lane.b32.xlu1 %v867_v31, %s2173_s28  ;;  %v1930_v38 = vpop.f32.mrb[17].mxu0  ;;  %930 = vrot.lane.b32.xlu0 %v882_v32, %s2174_s29  ;;  %v835_v39 = vmax.f32 %v825_v35, 0.0 }
 0x711   :  { %v868_v51 = vmul.f32 %v861_v16, %v835_v39  ;;  %v883_v52 = vmul.f32 %v876_v17, %v835_v39  ;;  %v898_v58 = vmul.f32 %v891_v21, %v835_v39  ;;  %v913_v59 = vmul.f32 %v906_v34, %v835_v39 }
 0x712   :  { %v830_v46 = vpop.f32.mrb[18].mxu0  ;;  %v853_v18 = vmul.f32 %v845_v8, %v835_v39  ;;  %v72_v8 = vld [vmem:[%s2638_s2 + $0x118] sm:$0xff] }
 0x713   :  { %942 = vrot.lane.b32.xlu1 %v897_v42, %s2175_s30  ;;  %v1933_v47 = vpop.f32.mrb[19].mxu0  ;;  %954 = vrot.lane.b32.xlu0 %v912_v43, %s2176_s4  ;;  %v836_v56 = vmax.f32 %v830_v46, 0.0 }
 0x715   :  { %v869_v62 = vmul.f32 %v865_v49, %v836_v56  ;;  %v884_v63 = vmul.f32 %v880_v60, %v836_v56  ;;  %v914_v3 = vmul.f32 %v910_v1, %v836_v56  ;;  %v899_v5 = vmul.f32 %v895_v2, %v836_v56  ;;  %v66_v1 = vld [vmem:[%s2638_s2 + $0xe8] sm:$0xff] }
 0x716   :  { %v854_v32 = vmul.f32 %v850_v7, %v836_v56  ;;  %v65_v56 = vld [vmem:[%s2638_s2 + $0xe0] sm:$0xff]  ;;  %v71_v7 = vld [vmem:[%s2638_s2 + $0x110] sm:$0xff] }
 0x717   :  { %920 = vrot.lane.b32.xlu1 %v868_v51, %s2173_s28  ;;  %932 = vrot.lane.b32.xlu0 %v883_v52, %s2174_s29  ;;  %v64_v52 = vld [vmem:[%s2638_s2 + $0xd8] sm:$0xff] }
 0x71b   :  { %944 = vrot.lane.b32.xlu1 %v898_v58, %s2175_s30  ;;  %956 = vrot.lane.b32.xlu0 %v913_v59, %s2176_s4 }
 0x71f   :  { %922 = vrot.lane.b32.xlu1 %v869_v62, %s2173_s28  ;;  %934 = vrot.lane.b32.xlu0 %v884_v63, %s2174_s29 }
 0x723   :  { %958 = vrot.lane.b32.xlu0 %v914_v3, %s2176_s4  ;;  %946 = vrot.lane.b32.xlu1 %v899_v5, %s2175_s30 }
 0x781   :  { %v919_v10 = vpop.permute.xlu1 %918  ;;  %v931_v11 = vpop.permute.xlu0 %930 }
 0x782   :  { %v963_v12 = vsel %vm278_vm6, %v852_v9, %v919_v10 }
 0x783   :  { %v966_v13 = vsel %vm744_vm4, %v963_v12, %v931_v11 }
 0x785   :  { %v943_v14 = vpop.permute.xlu1 %942  ;;  %v955_v15 = vpop.permute.xlu0 %954 }
 0x786   :  { %v970_v16 = vsel %vm969_vm7, %v966_v13, %v943_v14  ;;  %v74_v13 = vld [vmem:[%s2638_s2 + $0x128] sm:$0xff] }
 0x787   :  { %v974_v17 = vsel %vm973_vm9, %v970_v16, %v955_v15  ;;  %v73_v15 = vld [vmem:[%s2638_s2 + $0x120] sm:$0xff] }
 0x788   :  { %1955 = vmatmul.mubr.msk.f32.vlgmr.msra.gmra.mrb[6].mxu1 %vm977_vm12, %v974_v17 }
 0x789   :  { %v921_v19 = vpop.permute.xlu1 %920  ;;  %v933_v20 = vpop.permute.xlu0 %932  ;;  %1957 = vmatprep.mubr.msk.f32.mxu1 %vm2166_vm3, %v2167_v4 }
 0x78a   :  { %v964_v21 = vsel %vm278_vm6, %v853_v18, %v921_v19 }
 0x78b   :  { %v967_v22 = vsel %vm744_vm4, %v964_v21, %v933_v20 }
 0x78d   :  { %v945_v26 = vpop.permute.xlu1 %944  ;;  %v957_v27 = vpop.permute.xlu0 %956 }
 0x78e   :  { %v971_v30 = vsel %vm969_vm7, %v967_v22, %v945_v26 }
 0x78f   :  { %v975_v31 = vsel %vm973_vm9, %v971_v30, %v957_v27 }
 0x790   :  { %1958 = vmatmul.mubr.msk.f32.gmra.mrb[8].mxu1 %vm977_vm12, %v975_v31 }
 0x791   :  { %v923_v34 = vpop.permute.xlu1 %922  ;;  %v935_v35 = vpop.permute.xlu0 %934  ;;  %1960 = vmatprep.mubr.msk.f32.mxu1 %vm2166_vm3, %v2167_v4 }
 0x792   :  { %v965_v38 = vsel %vm278_vm6, %v854_v32, %v923_v34  ;;  %vm1156_vm6 = vcmask 31744  }
 0x793   :  { %v968_v39 = vsel %vm744_vm4, %v965_v38, %v935_v35  ;;  %vm2069_vm13 = vmpackc.low %vm1156_vm6, %vm1156_vm6 }
 0x795   :  { %v947_v42 = vpop.permute.xlu1 %946  ;;  %v959_v43 = vpop.permute.xlu0 %958 }
 0x796   :  { %v972_v46 = vsel %vm969_vm7, %v968_v39, %v947_v42 }
 0x797   :  { %v976_v47 = vsel %vm973_vm9, %v972_v46, %v959_v43 }
 0x798   :  { %1961 = vmatmul.mubr.msk.f32.gmra.mrb[10].mxu1 %vm977_vm12, %v976_v47 }
 0x85b   :  { %v1053_v49 = vpop.f32.mrb[6].mxu1 }
 0x85c   :  { %v1956_v51 = vpop.f32.mrb[7].mxu1  ;;  %v1054_v59 = vadd.f32 %v1053_v49, %v64_v52 }
 0x863   :  { %v1058_v58 = vpop.f32.mrb[8].mxu1 }
 0x864   :  { %v1059_v60 = vadd.f32 %v1058_v58, %v65_v56  ;;  %v1959_v62 = vpop.f32.mrb[9].mxu1 }
 0x866   :  { %v2064_v63 = vpack.c.bf16 %v1059_v60, %v1054_v59 }
 0x868   :  { %2065 = vmatprep.subr.bf16.mxu0 %v2064_v63  ;;  %2075 = vmatprep.subr.bf16.mxu1 %v2064_v63 }
 0x869   :  { %2067 = vmatpush3.bf16.msra.mxu0 %v2064_v63  ;;  %2077 = vmatpush3.bf16.msra.mxu1 %v2064_v63 }
 0x86b   :  { %v1063_v2 = vpop.f32.mrb[10].mxu1 }
 0x86c   :  { %v1064_v3 = vadd.f32 %v1063_v2, %v66_v1  ;;  %v1962_v5 = vpop.f32.mrb[11].mxu1 }
 0x86e   :  { %1967 = vmatprep.subr.mxu0 %v1064_v3  ;;  %1991 = vmatprep.subr.mxu1 %v1064_v3 }
 0x86f   :  { %1968 = vmatpush3.msra.mxu0 %v1064_v3  ;;  %1992 = vmatpush3.msra.mxu1 %v1064_v3 }
 0x870   :  { %1970 = vmatmul.mubr.msk.f32.vlgmr.msra.gmra.mrb[20].mxu0 %vm176_vm5, %v2245_v23  ;;  %2070 = vmatprep.subr.msk.bf16.mxu0 %vm2069_vm13, %v2064_v63  ;;  %v68_v23 = vld [vmem:[%s2638_s2 + $0xf8] sm:$0xff] }
 0x871   :  { %1972 = vmatprep.mubr.msk.f32.mxu0 %vm176_vm5, %v2250_v24  ;;  %2078 = vmatprep.subr.bf16.mxu1 %v2164_v0  ;;  %v69_v24 = vld [vmem:[%s2638_s2 + $0x100] sm:$0xff] }
 0x874   :  { %1973 = vmatmul.mubr.msk.f32.gmra.mrb[22].mxu0 %vm176_vm5, %v2259_v25  ;;  %v70_v25 = vld [vmem:[%s2638_s2 + $0x108] sm:$0xff] }
 0x875   :  { %1981 = vmatprep.mubr.msk.f32.mxu0 %vm1156_vm6, %v67_v6 }
 0x876   :  { %2073 = vmatpush3.bf16.xpose.msk.msra.mxu0 %vm2069_vm13, %v2064_v63 }
 0x877   :  { %1979 = vmatprep.subr.msk.mxu0 %vm1156_vm6, %v1064_v3 }
 0x87e   :  { %1980 = vmatpush3.xpose.msk.msra.mxu0 %vm1156_vm6, %v1064_v3 }
 0x881   :  { %1982 = vmatmul.mubr.msk.f32.vlgmr.msra.gmra.mrb[24].mxu0 %vm1156_vm6, %v68_v23 }
 0x882   :  { %1984 = vmatprep.mubr.msk.f32.mxu0 %vm1156_vm6, %v69_v24 }
 0x885   :  { %1985 = vmatmul.mubr.msk.f32.gmra.mrb[26].mxu0 %vm1156_vm6, %v70_v25 }
 0x943   :  { %v1971_v9 = vpop.f32.mrb[20].mxu0 }
 0x944   :  { %v1153_v10 = vmul.f32 %v1971_v9, %v72_v8  ;;  %v1133_v11 = vpop.f32.mrb[21].mxu0 }
 0x945   :  { %v1152_v12 = vmul.f32 %v1133_v11, %v71_v7 }
 0x946   :  { %v1160_v14 = vsel %vm1156_vm6, %v1153_v10, 0.0 }
 0x947   :  { %1161 = vadd.xlane.f32.xlu0 %v1160_v14  ;;  %v1974_v16 = vpop.f32.mrb[22].mxu0  ;;  %v1157_v17 = vsel %vm1156_vm6, %v1152_v12, 0.0 }
 0x948   :  { %v1155_v18 = vmul.f32 %v1974_v16, %v74_v13  ;;  %1158 = vadd.xlane.f32.xlu1 %v1157_v17  ;;  %v1143_v19 = vpop.f32.mrb[23].mxu0 }
 0x949   :  { %v1154_v20 = vmul.f32 %v1143_v19, %v73_v15 }
 0x94a   :  { %v1166_v21 = vsel %vm1156_vm6, %v1155_v18, 0.0 }
 0x94b   :  { %v1163_v22 = vsel %vm1156_vm6, %v1154_v20, 0.0 }
 0x94c   :  { %1167 = vadd.xlane.f32.xlu1 %v1166_v21  ;;  %1164 = vadd.xlane.f32.xlu0 %v1163_v22 }
 0x954   :  { %v1983_v26 = vpop.f32.mrb[24].mxu0 }
 0x955   :  { %v1256_v27 = vpop.f32.mrb[25].mxu0 }
 0x958   :  { %v1986_v30 = vpop.f32.mrb[26].mxu0 }
 0x959   :  { %v1266_v31 = vpop.f32.mrb[27].mxu0 }
 0x9d4   :  { %v1162_v32 = vpop.xlane.xlu0 %1161 }
 0x9d5   :  { %v1276_v34 = vadd.f32 %v1983_v26, %v1162_v32  ;;  %v1159_v35 = vpop.xlane.xlu1 %1158 }
 0x9d6   :  { %v1275_v38 = vadd.f32 %v1256_v27, %v1159_v35 }
 0x9d7   :  { %v1284_v39 = vmul.f32 0.2, %v1276_v34  ;;  %vm1280_vm1 = vcmp.gt.f32.partialorder %v1276_v34, 0.0 }
 0x9d8   :  { %v1283_v42 = vmul.f32 0.2, %v1275_v38  ;;  %vm1279_vm7 = vcmp.gt.f32.partialorder %v1275_v38, 0.0 }
 0x9d9   :  { %v1168_v43 = vpop.xlane.xlu1 %1167  ;;  %v1165_v46 = vpop.xlane.xlu0 %1164  ;;  %v1288_v47 = vsel %vm1280_vm1, %v1276_v34, %v1284_v39 }
 0x9da   :  { %v1278_v49 = vadd.f32 %v1986_v30, %v1168_v43  ;;  %v1277_v51 = vadd.f32 %v1266_v31, %v1165_v46  ;;  %v1292_v52 = vsel %vm79_vm10, %v1288_v47, -1e+30  ;;  %v1287_v56 = vsel %vm1279_vm7, %v1275_v38, %v1283_v42 }
 0x9db   :  { %v1298_v58 = vsel %vm176_vm5, %v1292_v52, -inf  ;;  %v1291_v59 = vsel %vm78_vm8, %v1287_v56, -1e+30 }
 0x9dc   :  { %v1286_v60 = vmul.f32 0.2, %v1278_v49  ;;  %v1285_v62 = vmul.f32 0.2, %v1277_v51  ;;  %1299 = vmax.xlane.f32.xlu1 %v1298_v58  ;;  %v1295_v63 = vsel %vm176_vm5, %v1291_v59, -inf  ;;  %vm1282_vm9 = vcmp.gt.f32.partialorder %v1278_v49, 0.0 }
 0x9dd   :  { %1296 = vmax.xlane.f32.xlu0 %v1295_v63  ;;  %vm1281_vm12 = vcmp.gt.f32.partialorder %v1277_v51, 0.0 }
 0x9de   :  { %v1290_v1 = vsel %vm1282_vm9, %v1278_v49, %v1286_v60  ;;  %v1289_v2 = vsel %vm1281_vm12, %v1277_v51, %v1285_v62 }
 0x9df   :  { %v1294_v3 = vsel %vm81_vm14, %v1290_v1, -1e+30  ;;  %v1293_v5 = vsel %vm80_vm11, %v1289_v2, -1e+30  ;;  %v75_v1 = vld [vmem:[%s2638_s2 + $0x130] sm:$0xff] }
 0x9e0   :  { %v1304_v6 = vsel %vm176_vm5, %v1294_v3, -inf  ;;  %v1301_v23 = vsel %vm176_vm5, %v1293_v5, -inf  ;;  %1999 = vmatprep.subr.msk.mxu0 %vm589_vm15, %v75_v1 }
 0x9e1   :  { %1305 = vmax.xlane.f32.xlu1 %v1304_v6  ;;  %1302 = vmax.xlane.f32.xlu0 %v1301_v23 }
 0x9e2   :  { %2000 = vmatpush3.msk.msra.mxu0 %vm589_vm15, %v75_v1 }
 0xa69   :  { %v1300_v24 = vpop.xlane.xlu1 %1299 }
 0xa6a   :  { %vm1308_vm13 = vcmp.lt.f32.partialorder %v1300_v24, -1e+29  ;;  %v1297_v25 = vpop.xlane.xlu0 %1296 }
 0xa6b   :  { %v1312_v8 = vsel %vm1308_vm13, 0.0, %v1300_v24  ;;  %vm1307_vm1 = vcmp.lt.f32.partialorder %v1297_v25, -1e+29 }
 0xa6c   :  { %v1316_v7 = vsub.f32 %v1292_v52, %v1312_v8  ;;  %v1311_v9 = vsel %vm1307_vm1, 0.0, %v1297_v25 }
 0xa6d   :  { %v1315_v10 = vsub.f32 %v1291_v59, %v1311_v9 }
 0xa6e   :  { %v1321_v11 = vmul.f32 1.442695, %v1316_v7  ;;  %v1306_v12 = vpop.xlane.xlu1 %1305  ;;  %v1303_v13 = vpop.xlane.xlu0 %1302 }
 0xa6f   :  { %v1319_v14 = vmul.f32 1.442695, %v1315_v10  ;;  %vm1310_vm7 = vcmp.lt.f32.partialorder %v1306_v12, -1e+29  ;;  %vm1309_vm9 = vcmp.lt.f32.partialorder %v1303_v13, -1e+29 }
 0xa70   :  { %2136 = vpow2.f32 %v1321_v11  ;;  %v1314_v15 = vsel %vm1310_vm7, 0.0, %v1306_v12  ;;  %v1313_v16 = vsel %vm1309_vm9, 0.0, %v1303_v13 }
 0xa71   :  { %2138 = vpow2.f32 %v1319_v14  ;;  %v1318_v17 = vsub.f32 %v1294_v3, %v1314_v15  ;;  %v1317_v18 = vsub.f32 %v1293_v5, %v1313_v16  ;;  %v76_v15 = vld [vmem:[%s2638_s2 + $0x138] sm:$0xff] }
 0xa72   :  { %v1463_v16 = vrot.slane %v76_v15, %v2364_v29 }
 0xa73   :  { %v1325_v19 = vmul.f32 1.442695, %v1318_v17  ;;  %v1323_v20 = vmul.f32 1.442695, %v1317_v18 }
 0xa75   :  { %2140 = vpow2.f32 %v1325_v19 }
 0xa76   :  { %2142 = vpow2.f32 %v1323_v20 }
 0xa7a   :  { %v2137_v21 = vpop.eup %2136 }
 0xa7b   :  { %v2139_v22 = vpop.eup %2138  ;;  %v1328_v26 = vsel %vm79_vm10, %v2137_v21, 0.0 }
 0xa7c   :  { %v1334_v27 = vsel %vm176_vm5, %v1328_v26, 0.0  ;;  %v1327_v30 = vsel %vm78_vm8, %v2139_v22, 0.0 }
 0xa7d   :  { %1335 = vadd.xlane.f32.xlu1 %v1334_v27  ;;  %v1331_v31 = vsel %vm176_vm5, %v1327_v30, 0.0 }
 0xa7e   :  { %1332 = vadd.xlane.f32.xlu0 %v1331_v31 }
 0xa7f   :  { %v2141_v32 = vpop.eup %2140 }
 0xa80   :  { %v2143_v34 = vpop.eup %2142  ;;  %v1330_v35 = vsel %vm81_vm14, %v2141_v32, 0.0 }
 0xa81   :  { %v1340_v38 = vsel %vm176_vm5, %v1330_v35, 0.0  ;;  %v1329_v53 = vsel %vm80_vm11, %v2143_v34, 0.0 }
 0xa82   :  { %1341 = vadd.xlane.f32.xlu1 %v1340_v38  ;;  %v1337_v39 = vsel %vm176_vm5, %v1329_v53, 0.0 }
 0xa83   :  { %1338 = vadd.xlane.f32.xlu0 %v1337_v39 }
 0xb0a   :  { %v1336_v50 = vpop.xlane.xlu1 %1335 }
 0xb0b   :  { %vm1344_vm8 = vcmp.eq.f32.partialorder %v1336_v50, 0.0  ;;  %v1333_v42 = vpop.xlane.xlu0 %1332 }
 0xb0c   :  { %v1348_v43 = vsel %vm1344_vm8, 1.0, %v1336_v50  ;;  %vm1343_vm10 = vcmp.eq.f32.partialorder %v1333_v42, 0.0  ;;  %v77_v50 = vld [vmem:[%s2638_s2 + $0x140] sm:$0xff] }
 0xb0d   :  { %2144 = vrcp.f32 %v1348_v43  ;;  %v1347_v46 = vsel %vm1343_vm10, 1.0, %v1333_v42 }
 0xb0e   :  { %2146 = vrcp.f32 %v1347_v46 }
 0xb0f   :  { %v1342_v47 = vpop.xlane.xlu1 %1341 }
 0xb10   :  { %vm1346_vm12 = vcmp.eq.f32.partialorder %v1342_v47, 0.0  ;;  %v1339_v61 = vpop.xlane.xlu0 %1338 }
 0xb11   :  { %v1350_v49 = vsel %vm1346_vm12, 1.0, %v1342_v47  ;;  %vm1345_vm14 = vcmp.eq.f32.partialorder %v1339_v61, 0.0 }
 0xb12   :  { %2148 = vrcp.f32 %v1350_v49  ;;  %v1349_v54 = vsel %vm1345_vm14, 1.0, %v1339_v61  ;;  %v1576_v61 = vrot.slane %v77_v50, %v2364_v29 }
 0xb13   :  { %2150 = vrcp.f32 %v1349_v54 }
 0xb17   :  { %v2145_v51 = vpop.eup %2144 }
 0xb18   :  { %v2147_v52 = vpop.eup %2146  ;;  %v1354_v58 = vmul.f32 %v2145_v51, %v1328_v26 }
 0xb19   :  { %v1352_v56 = vmul.f32 %v2147_v52, %v1327_v30 }
 0xb1b   :  { %1993 = vmatprep.mubr.msk.f32.mxu1 %vm176_vm5, %v1352_v56 }
 0xb1c   :  { %v2149_v59 = vpop.eup %2148  ;;  %1994 = vmatmul.mubr.msk.f32.vlgmr.msra.gmra.mrb[12].mxu1 %vm176_vm5, %v1354_v58 }
 0xb1d   :  { %v2151_v60 = vpop.eup %2150  ;;  %v1358_v62 = vmul.f32 %v2149_v59, %v1330_v35 }
 0xb1e   :  { %v1356_v63 = vmul.f32 %v2151_v60, %v1329_v53 }
 0xb20   :  { %1996 = vmatprep.mubr.msk.f32.mxu1 %vm176_vm5, %v1356_v63 }
 0xb21   :  { %1997 = vmatmul.mubr.msk.f32.gmra.mrb[14].mxu1 %vm176_vm5, %v1358_v62  ;;  %vm1578_vm5 = vcmask 25600  }
 0xb22   :  { %2012 = vmatprep.mubr.msk.f32.mxu1 %vm2166_vm3, %v2167_v4 }
 0xbef   :  { %v1995_v2 = vpop.f32.mrb[12].mxu1 }
 0xbf0   :  { %v1457_v3 = vmax.f32 %v1995_v2, 0.0  ;;  %v1437_v5 = vpop.f32.mrb[13].mxu1 }
 0xbf1   :  { %v1456_v6 = vmax.f32 %v1437_v5, 0.0 }
 0xbf2   :  { %v1468_v23 = vrot.slane %v1457_v3, 4 }
 0xbf3   :  { %v1467_v24 = vrot.slane %v1456_v6, 4  ;;  %v2079_v25 = vpack.c.bf16 %v1457_v3, %v1456_v6 }
 0xbf4   :  { %v1998_v8 = vpop.f32.mrb[14].mxu1 }
 0xbf5   :  { %v1459_v7 = vmax.f32 %v1998_v8, 0.0  ;;  %v1447_v9 = vpop.f32.mrb[15].mxu1  ;;  %2080 = vmatpush3.bf16.msra.mxu1 %v2079_v25  ;;  %v1469_v10 = vsel %vm589_vm15, %v1467_v24, %v1468_v23 }
 0xbf6   :  { %v1458_v11 = vmax.f32 %v1447_v9, 0.0  ;;  %2001 = vmatprep.mubr.msk.f32.mxu0 %vm1156_vm6, %v1469_v10  ;;  %2081 = vmatprep.subr.bf16.mxu1 %v2164_v0 }
 0xbf8   :  { %v1470_v12 = vrot.slane %v1458_v11, 4  ;;  %v2082_v13 = vpack.c.bf16 %v1459_v7, %v1458_v11 }
 0xbfa   :  { %v1471_v14 = vsel %vm589_vm15, %v1468_v23, %v1470_v12  ;;  %2083 = vmatpush3.bf16.msra.mxu1 %v2082_v13 }
 0xbfb   :  { %2002 = vmatmul.mubr.msk.f32.vlgmr.msra.gmra.mrb[28].mxu0 %vm1156_vm6, %v1471_v14 }
 0xcce   :  { %v2003_v17 = vpop.f32.mrb[28].mxu0 }
 0xccf   :  { %v1551_v18 = vadd.f32 %v2003_v17, %v1463_v16  ;;  %v1545_v19 = vpop.f32.mrb[29].mxu0 }
 0xcd0   :  { %v1546_v20 = vadd.f32 %v1545_v19, %v1463_v16 }
 0xcd1   :  { %2152 = vtanh.f32 %v1551_v18 }
 0xcd2   :  { %2154 = vtanh.f32 %v1546_v20 }
 0xcdb   :  { %v2153_v0 = vpop.eup %2152 }
 0xcdc   :  { %v2155_v21 = vpop.eup %2154  ;;  %v1564_v22 = vsel %vm1156_vm6, %v2153_v0, 0.0 }
 0xcdd   :  { %v1565_v26 = vrot.slane %v1564_v22, 4  ;;  %v1556_v27 = vsel %vm1156_vm6, %v2155_v21, 0.0 }
 0xcde   :  { %v1557_v30 = vrot.slane %v1556_v27, 4 }
 0xcdf   :  { %v1566_v31 = vadd.f32 %v1565_v26, %v1564_v22 }
 0xce0   :  { %v1558_v32 = vadd.f32 %v1557_v30, %v1556_v27 }
 0xce1   :  { %v1567_v34 = vrot.slane %v1566_v31, 2 }
 0xce2   :  { %v1559_v35 = vrot.slane %v1558_v32, 2 }
 0xce3   :  { %v1568_v38 = vadd.f32 %v1567_v34, %v1566_v31 }
 0xce4   :  { %v1560_v53 = vadd.f32 %v1559_v35, %v1558_v32 }
 0xce5   :  { %v1569_v39 = vrot.slane %v1568_v38, 1 }
 0xce6   :  { %v1561_v42 = vrot.slane %v1560_v53, 1 }
 0xce7   :  { %v1570_v43 = vadd.f32 %v1569_v39, %v1568_v38 }
 0xce8   :  { %v1562_v46 = vadd.f32 %v1561_v42, %v1560_v53 }
 0xce9   :  { %v1571_v47 = vmul.f32 0.125, %v1570_v43 }
 0xcea   :  { %v1563_v49 = vmul.f32 0.125, %v1562_v46 }
 0xcec   :  { %v1572_v54 = vsel %vm693_vm0, %v1563_v49, %v1571_v47 }
 0xced   :  { %v1577_v51 = vmul.f32 %v1576_v61, %v1572_v54 }
 0xcef   :  { %v1579_v52 = vsel %vm1578_vm5, %v1577_v51, 0.0 }
 0xcf0   :  { %1580 = vadd.xlane.f32.xlu0 %v1579_v52 }
 0xd7d   :  { %v1581_v56 = vpop.xlane.xlu0 %1580 }
 0xd7e   :  { %v1582_v58 = vsel %vm704_vm2, %v1581_v56, -inf }
 0xd7f   :  { %v1583_v59 = vrot.slane %v1582_v58, 4 }
 0xd81   :  { %v1584_v60 = vmax.f32 %v1582_v58, %v1583_v59 }
 0xd83   :  { %v1585_v62 = vrot.slane %v1584_v60, 2 }
 0xd85   :  { %v1586_v63 = vmax.f32 %v1584_v60, %v1585_v62 }
 0xd87   :  { %v1587_v1 = vrot.slane %v1586_v63, 1 }
 0xd89   :  { %v1588_v2 = vmax.f32 %v1586_v63, %v1587_v1 }
 0xd8b   :  { %v1589_v3 = vsub.f32 %v1581_v56, %v1588_v2 }
 0xd8d   :  { %v1590_v5 = vmul.f32 1.442695, %v1589_v3 }
 0xd8f   :  { %2156 = vpow2.f32 %v1590_v5 }
 0xd99   :  { %v2157_v6 = vpop.eup %2156 }
 0xd9a   :  { %v1592_v23 = vsel %vm704_vm2, %v2157_v6, 0.0 }
 0xd9b   :  { %v1593_v24 = vrot.slane %v1592_v23, 4 }
 0xd9d   :  { %v1594_v25 = vadd.f32 %v1593_v24, %v1592_v23 }
 0xd9f   :  { %v1595_v8 = vrot.slane %v1594_v25, 2 }
 0xda1   :  { %v1596_v7 = vadd.f32 %v1595_v8, %v1594_v25 }
 0xda3   :  { %v1597_v9 = vrot.slane %v1596_v7, 1 }
 0xda5   :  { %v1598_v10 = vadd.f32 %v1597_v9, %v1596_v7 }
 0xda7   :  { %2158 = vrcp.f32 %v1598_v10 }
 0xdb1   :  { %v2159_v11 = vpop.eup %2158 }
 0xdb2   :  { %v1600_v12 = vmul.f32 %v2159_v11, %v2157_v6 }
 0xdb4   :  { %v1604_v13 = vrot.slane %v1600_v12, %v2364_v29  ;;  %v1614_v14 = vrot.slane %v1600_v12, %v736_v33 }
 0xdb6   :  { %v1605_v15 = vmul.f32 %v1604_v13, %v2392_v36  ;;  %v1606_v16 = vmul.f32 %v1604_v13, %v2397_v37  ;;  %v1615_v17 = vmul.f32 %v1614_v14, %v2410_v41  ;;  %v1607_v0 = vmul.f32 %v1604_v13, %v2422_v45 }
 0xdb7   :  { %v1616_v29 = vmul.f32 %v1614_v14, %v2429_v48  ;;  %v1617_v36 = vmul.f32 %v1614_v14, %v2445_v57 }
 0xdb8   :  { %v1608_v18 = vadd.f32 %v1605_v15, %v2405_v40  ;;  %v1609_v20 = vadd.f32 %v1606_v16, %v2417_v44  ;;  %v1610_v33 = vadd.f32 %v1607_v0, %v2436_v55 }
 0xdba   :  { %v1618_v19 = vadd.f32 %v1615_v17, %v1608_v18  ;;  %v1619_v28 = vadd.f32 %v1616_v29, %v1609_v20  ;;  %v1620_v37 = vadd.f32 %v1617_v36, %v1610_v33 }
 0xdbc   :  { %2013 = vmatmul.mubr.msk.f32.vlgmr.msra.gmra.mrb[16].mxu1 %vm744_vm4, %v1618_v19 }
 0xdbd   :  { %2015 = vmatprep.mubr.msk.f32.mxu1 %vm2166_vm3, %v2167_v4 }
 0xdc0   :  { %2016 = vmatmul.mubr.msk.f32.gmra.mrb[18].mxu1 %vm744_vm4, %v1619_v28 }
 0xdc1   :  { %2018 = vmatprep.mubr.msk.f32.mxu1 %vm2166_vm3, %v2167_v4 }
 0xdc4   :  { %2019 = vmatmul.mubr.msk.f32.gmra.mrb[20].mxu1 %vm744_vm4, %v1620_v37 }
 0xe8f   :  { %v1696_v40 = vpop.f32.mrb[16].mxu1 }
 0xe90   :  { %v2014_v41 = vpop.f32.mrb[17].mxu1 }
 0xe93   :  { %v1700_v44 = vpop.f32.mrb[18].mxu1 }
 0xe94   :  { %v2017_v45 = vpop.f32.mrb[19].mxu1 }
 0xe97   :  { %v1704_v48 = vpop.f32.mrb[20].mxu1 }
 0xe98   :  { %v1708_v21 = vsel %vm1156_vm6, %v1704_v48, -inf  ;;  %v2020_v22 = vpop.f32.mrb[21].mxu1 }
 0xe99   :  { %v1709_v26 = vrot.slane %v1708_v21, 4 }
 0xe9b   :  { %v1710_v55 = vmax.f32 %v1708_v21, %v1709_v26 }
 0xe9d   :  { %v1711_v27 = vrot.slane %v1710_v55, 2 }
 0xe9f   :  { %v1712_v30 = vmax.f32 %v1710_v55, %v1711_v27 }
 0xea1   :  { %v1713_v31 = vrot.slane %v1712_v30, 1 }
 0xea3   :  { %v1714_v57 = vmax.f32 %v1712_v30, %v1713_v31 }
 0xea5   :  { %v1715_v32 = vsub.f32 %v1704_v48, %v1714_v57 }
 0xea7   :  { %v1716_v34 = vmul.f32 1.442695, %v1715_v32 }
 0xea9   :  { %2160 = vpow2.f32 %v1716_v34 }
 0xeb3   :  { %v2161_v4 = vpop.eup %2160 }
 0xeb4   :  { %v1718_v35 = vsel %vm1156_vm6, %v2161_v4, 0.0 }
 0xeb5   :  { %v1719_v38 = vrot.slane %v1718_v35, 4 }
 0xeb7   :  { %v1720_v53 = vadd.f32 %v1719_v38, %v1718_v35 }
 0xeb9   :  { %v1721_v39 = vrot.slane %v1720_v53, 2 }
 0xebb   :  { %v1722_v50 = vadd.f32 %v1721_v39, %v1720_v53 }
 0xebd   :  { %v1723_v42 = vrot.slane %v1722_v50, 1 }
 0xebf   :  { %v1724_v43 = vadd.f32 %v1723_v42, %v1722_v50 }
 0xec1   :  { %2162 = vrcp.f32 %v1724_v43 }
 0xecb   :  { %v2163_v46 = vpop.eup %2162 }
 0xecc   :  { %v1726_v47 = vmul.f32 %v2163_v46, %v2161_v4 }
 0xece   :  { %1727 = vst.msk [vmem:[%s2641_s3] sm:$0xff] %vm1156_vm6, %v1726_v47 }

</bundles_post_ra>
